<compile_context>
chip_gen: v6e
topology: v6e:2x2x1
jax: 0.10.0
libtpu: 0.0.40
codegen_flags: <defaults>
</compile_context>

<pallas_src>
import jax
import jax.numpy as jnp
import numpy as np
from jax import lax
from jax.experimental import pallas as pl
from jax.experimental.pallas import tpu as pltpu


def _round_up(n, m):
    return ((n + m - 1) // m) * m


# ----------------------------------------------------------------------------
# Pallas kernel: fully fused bidirectional LSTM.
#   inputs : x   (T, B, D)   -- time-major input sequence
#            w   (KP, 8H)    -- fused weights:
#                               rows [0:D)        -> W_ih_f  into cols [0:4H)
#                               rows [D:2D)       -> W_ih_b  into cols [4H:8H)
#                               rows [2D:2D+H)    -> W_hh_f  into cols [0:4H)
#                               rows [2D+H:2D+2H) -> W_hh_b  into cols [4H:8H)
#                               row  2D+2H        -> [b_f | b_b]   (bias row)
#   outputs: out (T, B, 2H)  -- [:, :, :H] forward, [:, :, H:] backward
#            hn  (B, 2H), cn (B, 2H)  -- already in cat_directions layout
#   scratch: lhs (B, KP) = [x_t | x_tb | h_f | h_b | 1 | pad], c_f, c_b (B, H)
# ----------------------------------------------------------------------------
def bidir_lstm_kernel(x_ref, w_ref, out_ref, hn_ref, cn_ref,
                      lhs_sc, cf_sc, cb_sc):
    T, B, D = x_ref.shape
    H = cf_sc.shape[1]
    G = 4 * H                 # gate width per direction
    HOFF = 2 * D              # offset of [h_f | h_b] inside the fused lhs
    ONE = 2 * D + 2 * H       # ones column (drives the bias row of w)

    # init_hidden: zero state; clear fused lhs (incl. pad lanes), arm bias col.
    lhs_sc[...] = jnp.zeros_like(lhs_sc)
    lhs_sc[:, ONE:ONE + 1] = jnp.ones((B, 1), jnp.float32)
    cf_sc[...] = jnp.zeros_like(cf_sc)
    cb_sc[...] = jnp.zeros_like(cb_sc)

    def gates(z, c_prev):
        # PyTorch gate order (i, f, g, o).  NOTE: H=32 -> sub-128 lane slices;
        # fine at this size, pick H a multiple of 128 for real workloads.
        i = jax.nn.sigmoid(z[:, 0 * H:1 * H])
        f = jax.nn.sigmoid(z[:, 1 * H:2 * H])
        g = jnp.tanh(z[:, 2 * H:3 * H])
        o = jax.nn.sigmoid(z[:, 3 * H:4 * H])
        c_new = f * c_prev + i * g
        h_new = o * jnp.tanh(c_new)
        return h_new, c_new

    def step(t, carry):
        tb = T - 1 - t
        # Stage this step's inputs into the fused lhs carry.
        lhs_sc[:, 0:D] = x_ref[t]            # forward input at time t
        lhs_sc[:, D:2 * D] = x_ref[tb]       # backward input at time T-1-t

        # ONE MXU matmul: input proj + recurrent proj + bias, both directions.
        z = jnp.dot(lhs_sc[...], w_ref[...],
                    preferred_element_type=jnp.float32)

        hf_new, cf_new = gates(z[:, 0:G], cf_sc[...])
        hb_new, cb_new = gates(z[:, G:2 * G], cb_sc[...])

        lhs_sc[:, HOFF:HOFF + H] = hf_new
        lhs_sc[:, HOFF + H:HOFF + 2 * H] = hb_new
        cf_sc[...] = cf_new
        cb_sc[...] = cb_new

        out_ref[t, :, 0:H] = hf_new          # fwd hidden at time t
        out_ref[tb, :, H:2 * H] = hb_new     # bwd hidden at time T-1-t
        return carry

    lax.fori_loop(0, T, step, 0, unroll=True if T <= 32 else 4)

    # cat_directions layout: [..., :H] = forward final, [..., H:] = backward.
    hn_ref[...] = lhs_sc[:, HOFF:HOFF + 2 * H]
    cn_ref[:, 0:H] = cf_sc[...]
    cn_ref[:, H:2 * H] = cb_sc[...]


def bidir_lstm(x_tm, w_fused, hidden_size):
    """Run the fused bidirectional LSTM through the Pallas kernel."""
    T, B, D = x_tm.shape
    H = hidden_size
    KP = w_fused.shape[0]
    assert w_fused.shape[1] == 8 * H and KP >= 2 * D + 2 * H + 1

    out_shapes = (
        jax.ShapeDtypeStruct((T, B, 2 * H), jnp.float32),   # per-step hidden
        jax.ShapeDtypeStruct((B, 2 * H), jnp.float32),      # hn (cat layout)
        jax.ShapeDtypeStruct((B, 2 * H), jnp.float32),      # cn (cat layout)
    )
    vmem = pl.BlockSpec(memory_space=pltpu.MemorySpace.VMEM)

    # VMEM footprint (f32 words): inputs + outputs + scratch, with slack.
    elems = (T * B * D                    # x
             + KP * 8 * H                 # fused weight
             + T * B * 2 * H              # out
             + 2 * B * 2 * H              # hn, cn
             + B * KP + 2 * B * H)        # scratch
    vmem_limit = int(min(max(2 * 4 * elems, 4 * 2 ** 20), 64 * 2 ** 20))

    flops = T * (2 * B * KP * 8 * H + 24 * B * 2 * H)
    transcendentals = T * B * 10 * H          # 3 sigmoid + 2 tanh per dir
    bytes_accessed = 4 * (T * B * D + KP * 8 * H
                          + T * B * 2 * H + 4 * B * 2 * H)

    return pl.pallas_call(
        bidir_lstm_kernel,
        out_shape=out_shapes,
        in_specs=[vmem, vmem],
        out_specs=(vmem, vmem, vmem),
        scratch_shapes=[
            pltpu.VMEM((B, KP), jnp.float32),   # fused lhs [x_t|x_tb|h_f|h_b|1]
            pltpu.VMEM((B, H), jnp.float32),    # c_f
            pltpu.VMEM((B, H), jnp.float32),    # c_b
        ],
        compiler_params=pltpu.CompilerParams(vmem_limit_bytes=vmem_limit),
        cost_estimate=pl.CostEstimate(
            flops=int(flops),
            transcendentals=int(transcendentals),
            bytes_accessed=int(bytes_accessed)),
    )(x_tm, w_fused)


# ----------------------------------------------------------------------------
# Encoder forward (bidirectional=True), matching the PyTorch module.
# ----------------------------------------------------------------------------
def encoder_forward(x, params):
    """x: (B, T, D) batch_first, like the PyTorch module.

    Returns (outputs, (hn_cat, cn_cat)):
      outputs: (B, T, 2H)
      hn_cat:  (1, B, 2H)   (= cat_directions of the (2, B, H) final h)
      cn_cat:  (1, B, 2H)
    """
    H = params["w_hh_f"].shape[0]
    B, T, D = x.shape
    x_tm = jnp.transpose(x, (1, 0, 2))                     # (T, B, D) time-major

    # Fused block-structured weight: one per-step MXU matmul computes input
    # projection + recurrent projection + bias for BOTH directions.
    HOFF = 2 * D
    ONE = 2 * D + 2 * H
    KP = _round_up(ONE + 1, 8)                             # pad contraction dim
    W = jnp.zeros((KP, 8 * H), jnp.float32)
    W = W.at[0:D, 0:4 * H].set(params["w_ih_f"])
    W = W.at[D:2 * D, 4 * H:8 * H].set(params["w_ih_b"])
    W = W.at[HOFF:HOFF + H, 0:4 * H].set(params["w_hh_f"])
    W = W.at[HOFF + H:HOFF + 2 * H, 4 * H:8 * H].set(params["w_hh_b"])
    W = W.at[ONE, 0:4 * H].set(params["b_f"].reshape(-1))
    W = W.at[ONE, 4 * H:8 * H].set(params["b_b"].reshape(-1))

    out_tm, hn_cat, cn_cat = bidir_lstm(x_tm, W, H)

    # TODO(synk): emit batch-first (B, T, 2H) from the kernel to drop this
    # final XLA transpose.
    outputs = jnp.transpose(out_tm, (1, 0, 2))             # (B, T, 2H)
    return outputs, (hn_cat[None], cn_cat[None])           # (1, B, 2H) each


# ----------------------------------------------------------------------------
# Pure-JAX reference (lax.scan) for numeric validation.
# ----------------------------------------------------------------------------
def _ref_lstm_dir(x_tmajor, w_ih, w_hh, b):
    T, B, _ = x_tmajor.shape
    H = w_hh.shape[0]

    def step(carry, x_t):
        h, c = carry
        z = x_t @ w_ih + h @ w_hh + b
        i = jax.nn.sigmoid(z[:, 0 * H:1 * H])
        f = jax.nn.sigmoid(z[:, 1 * H:2 * H])
        g = jnp.tanh(z[:, 2 * H:3 * H])
        o = jax.nn.sigmoid(z[:, 3 * H:4 * H])
        c = f * c + i * g
        h = o * jnp.tanh(c)
        return (h, c), h

    init = (jnp.zeros((B, H), jnp.float32), jnp.zeros((B, H), jnp.float32))
    (h_n, c_n), out = lax.scan(step, init, x_tmajor)
    return out, h_n, c_n


def encoder_forward_ref(x, params):
    x_t = jnp.transpose(x, (1, 0, 2))
    out_f, h_f, c_f = _ref_lstm_dir(x_t, params["w_ih_f"], params["w_hh_f"], params["b_f"])
    out_b, h_b, c_b = _ref_lstm_dir(x_t[::-1], params["w_ih_b"], params["w_hh_b"], params["b_b"])
    out_b = out_b[::-1]
    outputs = jnp.transpose(jnp.concatenate([out_f, out_b], axis=-1), (1, 0, 2))
    hn = jnp.stack([h_f, h_b], axis=0)
    cn = jnp.stack([c_f, c_b], axis=0)
    hn_cat = jnp.concatenate([hn[0:2:2], hn[1:2:2]], axis=2)
    cn_cat = jnp.concatenate([cn[0:2:2], cn[1:2:2]], axis=2)
    return outputs, (hn_cat, cn_cat)


# ----------------------------------------------------------------------------
# Deterministic parameter init (nn.LSTM scheme: U(-1/sqrt(H), 1/sqrt(H))).
# Weights are stored pre-transposed for x @ W / h @ W.
# ----------------------------------------------------------------------------
def init_params(key, input_size, hidden_size):
    H = hidden_size
    bound = 1.0 / np.sqrt(H)
    keys = jax.random.split(key, 8)

    def u(k, shape):
        return jax.random.uniform(k, shape, jnp.float32, -bound, bound)

    params = {}
    params["w_ih_f"] = u(keys[0], (input_size, 4 * H))
    params["w_hh_f"] = u(keys[1], (H, 4 * H))
    params["b_f"] = u(keys[2], (1, 4 * H)) + u(keys[3], (1, 4 * H))
    params["w_ih_b"] = u(keys[4], (input_size, 4 * H))
    params["w_hh_b"] = u(keys[5], (H, 4 * H))
    params["b_b"] = u(keys[6], (1, 4 * H)) + u(keys[7], (1, 4 * H))
    return params


if __name__ == "__main__":
    B, T, D, H = 2, 8, 8, 32   # batch, seq, input_size, hidden_size

    key = jax.random.PRNGKey(0)
    k_x, k_p = jax.random.split(key)
    x = jax.random.normal(k_x, (B, T, D), jnp.float32)
    params = init_params(k_p, D, H)

    fwd = jax.jit(encoder_forward)
    outputs, (hn, cn) = jax.block_until_ready(fwd(x, params))

    # shape checks (match PyTorch bidirectional Encoder semantics)
    assert outputs.shape == (B, T, 2 * H)
    assert hn.shape == (1, B, 2 * H)
    assert cn.shape == (1, B, 2 * H)

    # numeric check vs pure-JAX reference
    ref_out, (ref_hn, ref_cn) = encoder_forward_ref(x, params)
    np.testing.assert_allclose(np.asarray(outputs), np.asarray(ref_out), atol=1e-5, rtol=1e-5)
    np.testing.assert_allclose(np.asarray(hn), np.asarray(ref_hn), atol=1e-5, rtol=1e-5)
    np.testing.assert_allclose(np.asarray(cn), np.asarray(ref_cn), atol=1e-5, rtol=1e-5)

    print("KERNEL_OK")
</pallas_src>

<mosaic_0001>
module attributes {stable_mosaic.version = 11 : i64} {
  func.func @bidir_lstm_kernel(%arg0: memref<8x2x8xf32, #tpu.memory_space<vmem>>, %arg1: memref<88x256xf32, #tpu.memory_space<vmem>>, %arg2: memref<8x2x64xf32, #tpu.memory_space<vmem>>, %arg3: memref<2x64xf32, #tpu.memory_space<vmem>>, %arg4: memref<2x64xf32, #tpu.memory_space<vmem>>, %arg5: memref<2x88xf32, #tpu.memory_space<vmem>>, %arg6: memref<2x32xf32, #tpu.memory_space<vmem>>, %arg7: memref<2x32xf32, #tpu.memory_space<vmem>>) attributes {dimension_semantics = [], scalar_prefetch = 0 : i64, scratch_operands = 3 : i64, tpu.core_type = #tpu.core_type<tc>} {
    %cst = arith.constant 0.000000e+00 : f32
    %0 = vector.broadcast %cst : f32 to vector<2x88xf32>
    %c0 = arith.constant 0 : index
    %c0_0 = arith.constant 0 : index
    %1 = vector.load %arg5[%c0, %c0_0] : memref<2x88xf32, #tpu.memory_space<vmem>>, vector<2x88xf32>
    tpu.vector_store %arg5[%c0, %c0_0], %0 {strides = array<i32>} : memref<2x88xf32, #tpu.memory_space<vmem>>, vector<2x88xf32>,
    %cst_1 = arith.constant 1.000000e+00 : f32
    %2 = vector.broadcast %cst_1 : f32 to vector<2x1xf32>
    %c0_2 = arith.constant 0 : index
    %c80 = arith.constant 80 : index
    %3 = vector.load %arg5[%c0_2, %c80] : memref<2x88xf32, #tpu.memory_space<vmem>>, vector<2x1xf32>
    tpu.vector_store %arg5[%c0_2, %c80], %2 {strides = array<i32>} : memref<2x88xf32, #tpu.memory_space<vmem>>, vector<2x1xf32>,
    %cst_3 = arith.constant 0.000000e+00 : f32
    %4 = vector.broadcast %cst_3 : f32 to vector<2x32xf32>
    %c0_4 = arith.constant 0 : index
    %c0_5 = arith.constant 0 : index
    %5 = vector.load %arg6[%c0_4, %c0_5] : memref<2x32xf32, #tpu.memory_space<vmem>>, vector<2x32xf32>
    tpu.vector_store %arg6[%c0_4, %c0_5], %4 {strides = array<i32>} : memref<2x32xf32, #tpu.memory_space<vmem>>, vector<2x32xf32>,
    %cst_6 = arith.constant 0.000000e+00 : f32
    %6 = vector.broadcast %cst_6 : f32 to vector<2x32xf32>
    %c0_7 = arith.constant 0 : index
    %c0_8 = arith.constant 0 : index
    %7 = vector.load %arg7[%c0_7, %c0_8] : memref<2x32xf32, #tpu.memory_space<vmem>>, vector<2x32xf32>
    tpu.vector_store %arg7[%c0_7, %c0_8], %6 {strides = array<i32>} : memref<2x32xf32, #tpu.memory_space<vmem>>, vector<2x32xf32>,
    %c0_i32 = arith.constant 0 : i32
    %c7_i32 = arith.constant 7 : i32
    %8 = arith.subi %c7_i32, %c0_i32 : i32
    %9 = arith.index_cast %c0_i32 : i32 to index
    %c0_9 = arith.constant 0 : index
    %c0_10 = arith.constant 0 : index
    %10 = vector.load %arg0[%9, %c0_9, %c0_10] : memref<8x2x8xf32, #tpu.memory_space<vmem>>, vector<1x2x8xf32>
    %11 = vector.shape_cast %10 : vector<1x2x8xf32> to vector<2x8xf32>
    %c0_11 = arith.constant 0 : index
    %c0_12 = arith.constant 0 : index
    %12 = vector.load %arg5[%c0_11, %c0_12] : memref<2x88xf32, #tpu.memory_space<vmem>>, vector<2x8xf32>
    tpu.vector_store %arg5[%c0_11, %c0_12], %11 {strides = array<i32>} : memref<2x88xf32, #tpu.memory_space<vmem>>, vector<2x8xf32>,
    %13 = arith.index_cast %8 : i32 to index
    %c0_13 = arith.constant 0 : index
    %c0_14 = arith.constant 0 : index
    %14 = vector.load %arg0[%13, %c0_13, %c0_14] : memref<8x2x8xf32, #tpu.memory_space<vmem>>, vector<1x2x8xf32>
    %15 = vector.shape_cast %14 : vector<1x2x8xf32> to vector<2x8xf32>
    %c0_15 = arith.constant 0 : index
    %c8 = arith.constant 8 : index
    %16 = vector.load %arg5[%c0_15, %c8] : memref<2x88xf32, #tpu.memory_space<vmem>>, vector<2x8xf32>
    tpu.vector_store %arg5[%c0_15, %c8], %15 {strides = array<i32>} : memref<2x88xf32, #tpu.memory_space<vmem>>, vector<2x8xf32>,
    %c0_16 = arith.constant 0 : index
    %c0_17 = arith.constant 0 : index
    %17 = vector.load %arg5[%c0_16, %c0_17] : memref<2x88xf32, #tpu.memory_space<vmem>>, vector<2x88xf32>
    %c0_18 = arith.constant 0 : index
    %c0_19 = arith.constant 0 : index
    %18 = vector.load %arg1[%c0_18, %c0_19] : memref<88x256xf32, #tpu.memory_space<vmem>>, vector<88x256xf32>
    %cst_20 = arith.constant dense<0.000000e+00> : vector<2x256xf32>
    %19 = tpu.matmul %17, %18, %cst_20 {dimension_numbers = #tpu.dot_dimension_numbers<[1], [0], [0], [1], [0, 0, 1, 1], [], []>} : vector<2x88xf32>, vector<88x256xf32>, vector<2x256xf32> -> vector<2x256xf32>
    %20 = vector.extract_strided_slice %19 {offsets = [0, 0], sizes = [2, 128], strides = [1, 1]} : vector<2x256xf32> to vector<2x128xf32>
    %c0_21 = arith.constant 0 : index
    %c0_22 = arith.constant 0 : index
    %21 = vector.load %arg6[%c0_21, %c0_22] : memref<2x32xf32, #tpu.memory_space<vmem>>, vector<2x32xf32>
    %22 = vector.extract_strided_slice %20 {offsets = [0, 0], sizes = [2, 32], strides = [1, 1]} : vector<2x128xf32> to vector<2x32xf32>
    %23 = arith.negf %22 : vector<2x32xf32>
    %24 = math.exp %23 : vector<2x32xf32>
    %cst_23 = arith.constant 1.000000e+00 : f32
    %25 = vector.broadcast %cst_23 : f32 to vector<2x32xf32>
    %26 = arith.addf %25, %24 : vector<2x32xf32>
    %27 = arith.divf %25, %26 : vector<2x32xf32>
    %28 = vector.extract_strided_slice %20 {offsets = [0, 32], sizes = [2, 32], strides = [1, 1]} : vector<2x128xf32> to vector<2x32xf32>
    %29 = arith.negf %28 : vector<2x32xf32>
    %30 = math.exp %29 : vector<2x32xf32>
    %cst_24 = arith.constant 1.000000e+00 : f32
    %31 = vector.broadcast %cst_24 : f32 to vector<2x32xf32>
    %32 = arith.addf %31, %30 : vector<2x32xf32>
    %33 = arith.divf %31, %32 : vector<2x32xf32>
    %34 = vector.extract_strided_slice %20 {offsets = [0, 64], sizes = [2, 32], strides = [1, 1]} : vector<2x128xf32> to vector<2x32xf32>
    %35 = math.tanh %34 : vector<2x32xf32>
    %36 = vector.extract_strided_slice %20 {offsets = [0, 96], sizes = [2, 32], strides = [1, 1]} : vector<2x128xf32> to vector<2x32xf32>
    %37 = arith.negf %36 : vector<2x32xf32>
    %38 = math.exp %37 : vector<2x32xf32>
    %cst_25 = arith.constant 1.000000e+00 : f32
    %39 = vector.broadcast %cst_25 : f32 to vector<2x32xf32>
    %40 = arith.addf %39, %38 : vector<2x32xf32>
    %41 = arith.divf %39, %40 : vector<2x32xf32>
    %42 = arith.mulf %33, %21 : vector<2x32xf32>
    %43 = arith.mulf %27, %35 : vector<2x32xf32>
    %44 = arith.addf %42, %43 : vector<2x32xf32>
    %45 = math.tanh %44 : vector<2x32xf32>
    %46 = arith.mulf %41, %45 : vector<2x32xf32>
    %47 = vector.extract_strided_slice %19 {offsets = [0, 128], sizes = [2, 128], strides = [1, 1]} : vector<2x256xf32> to vector<2x128xf32>
    %c0_26 = arith.constant 0 : index
    %c0_27 = arith.constant 0 : index
    %48 = vector.load %arg7[%c0_26, %c0_27] : memref<2x32xf32, #tpu.memory_space<vmem>>, vector<2x32xf32>
    %49 = vector.extract_strided_slice %47 {offsets = [0, 0], sizes = [2, 32], strides = [1, 1]} : vector<2x128xf32> to vector<2x32xf32>
    %50 = arith.negf %49 : vector<2x32xf32>
    %51 = math.exp %50 : vector<2x32xf32>
    %cst_28 = arith.constant 1.000000e+00 : f32
    %52 = vector.broadcast %cst_28 : f32 to vector<2x32xf32>
    %53 = arith.addf %52, %51 : vector<2x32xf32>
    %54 = arith.divf %52, %53 : vector<2x32xf32>
    %55 = vector.extract_strided_slice %47 {offsets = [0, 32], sizes = [2, 32], strides = [1, 1]} : vector<2x128xf32> to vector<2x32xf32>
    %56 = arith.negf %55 : vector<2x32xf32>
    %57 = math.exp %56 : vector<2x32xf32>
    %cst_29 = arith.constant 1.000000e+00 : f32
    %58 = vector.broadcast %cst_29 : f32 to vector<2x32xf32>
    %59 = arith.addf %58, %57 : vector<2x32xf32>
    %60 = arith.divf %58, %59 : vector<2x32xf32>
    %61 = vector.extract_strided_slice %47 {offsets = [0, 64], sizes = [2, 32], strides = [1, 1]} : vector<2x128xf32> to vector<2x32xf32>
    %62 = math.tanh %61 : vector<2x32xf32>
    %63 = vector.extract_strided_slice %47 {offsets = [0, 96], sizes = [2, 32], strides = [1, 1]} : vector<2x128xf32> to vector<2x32xf32>
    %64 = arith.negf %63 : vector<2x32xf32>
    %65 = math.exp %64 : vector<2x32xf32>
    %cst_30 = arith.constant 1.000000e+00 : f32
    %66 = vector.broadcast %cst_30 : f32 to vector<2x32xf32>
    %67 = arith.addf %66, %65 : vector<2x32xf32>
    %68 = arith.divf %66, %67 : vector<2x32xf32>
    %69 = arith.mulf %60, %48 : vector<2x32xf32>
    %70 = arith.mulf %54, %62 : vector<2x32xf32>
    %71 = arith.addf %69, %70 : vector<2x32xf32>
    %72 = math.tanh %71 : vector<2x32xf32>
    %73 = arith.mulf %68, %72 : vector<2x32xf32>
    %c0_31 = arith.constant 0 : index
    %c16 = arith.constant 16 : index
    %74 = vector.load %arg5[%c0_31, %c16] : memref<2x88xf32, #tpu.memory_space<vmem>>, vector<2x32xf32>
    tpu.vector_store %arg5[%c0_31, %c16], %46 {strides = array<i32>} : memref<2x88xf32, #tpu.memory_space<vmem>>, vector<2x32xf32>,
    %c0_32 = arith.constant 0 : index
    %c48 = arith.constant 48 : index
    %75 = vector.load %arg5[%c0_32, %c48] : memref<2x88xf32, #tpu.memory_space<vmem>>, vector<2x32xf32>
    tpu.vector_store %arg5[%c0_32, %c48], %73 {strides = array<i32>} : memref<2x88xf32, #tpu.memory_space<vmem>>, vector<2x32xf32>,
    %c0_33 = arith.constant 0 : index
    %c0_34 = arith.constant 0 : index
    %76 = vector.load %arg6[%c0_33, %c0_34] : memref<2x32xf32, #tpu.memory_space<vmem>>, vector<2x32xf32>
    tpu.vector_store %arg6[%c0_33, %c0_34], %44 {strides = array<i32>} : memref<2x32xf32, #tpu.memory_space<vmem>>, vector<2x32xf32>,
    %c0_35 = arith.constant 0 : index
    %c0_36 = arith.constant 0 : index
    %77 = vector.load %arg7[%c0_35, %c0_36] : memref<2x32xf32, #tpu.memory_space<vmem>>, vector<2x32xf32>
    tpu.vector_store %arg7[%c0_35, %c0_36], %71 {strides = array<i32>} : memref<2x32xf32, #tpu.memory_space<vmem>>, vector<2x32xf32>,
    %78 = arith.index_cast %c0_i32 : i32 to index
    %c0_37 = arith.constant 0 : index
    %c0_38 = arith.constant 0 : index
    %79 = vector.load %arg2[%78, %c0_37, %c0_38] : memref<8x2x64xf32, #tpu.memory_space<vmem>>, vector<1x2x32xf32>
    %80 = vector.shape_cast %79 : vector<1x2x32xf32> to vector<2x32xf32>
    %81 = vector.shape_cast %46 : vector<2x32xf32> to vector<1x2x32xf32>
    tpu.vector_store %arg2[%78, %c0_37, %c0_38], %81 {strides = array<i32>} : memref<8x2x64xf32, #tpu.memory_space<vmem>>, vector<1x2x32xf32>,
    %82 = arith.index_cast %8 : i32 to index
    %c0_39 = arith.constant 0 : index
    %c32 = arith.constant 32 : index
    %83 = vector.load %arg2[%82, %c0_39, %c32] : memref<8x2x64xf32, #tpu.memory_space<vmem>>, vector<1x2x32xf32>
    %84 = vector.shape_cast %83 : vector<1x2x32xf32> to vector<2x32xf32>
    %85 = vector.shape_cast %73 : vector<2x32xf32> to vector<1x2x32xf32>
    tpu.vector_store %arg2[%82, %c0_39, %c32], %85 {strides = array<i32>} : memref<8x2x64xf32, #tpu.memory_space<vmem>>, vector<1x2x32xf32>,
    %c1_i32 = arith.constant 1 : i32
    %c7_i32_40 = arith.constant 7 : i32
    %86 = arith.subi %c7_i32_40, %c1_i32 : i32
    %87 = arith.index_cast %c1_i32 : i32 to index
    %c0_41 = arith.constant 0 : index
    %c0_42 = arith.constant 0 : index
    %88 = vector.load %arg0[%87, %c0_41, %c0_42] : memref<8x2x8xf32, #tpu.memory_space<vmem>>, vector<1x2x8xf32>
    %89 = vector.shape_cast %88 : vector<1x2x8xf32> to vector<2x8xf32>
    %c0_43 = arith.constant 0 : index
    %c0_44 = arith.constant 0 : index
    %90 = vector.load %arg5[%c0_43, %c0_44] : memref<2x88xf32, #tpu.memory_space<vmem>>, vector<2x8xf32>
    tpu.vector_store %arg5[%c0_43, %c0_44], %89 {strides = array<i32>} : memref<2x88xf32, #tpu.memory_space<vmem>>, vector<2x8xf32>,
    %91 = arith.index_cast %86 : i32 to index
    %c0_45 = arith.constant 0 : index
    %c0_46 = arith.constant 0 : index
    %92 = vector.load %arg0[%91, %c0_45, %c0_46] : memref<8x2x8xf32, #tpu.memory_space<vmem>>, vector<1x2x8xf32>
    %93 = vector.shape_cast %92 : vector<1x2x8xf32> to vector<2x8xf32>
    %c0_47 = arith.constant 0 : index
    %c8_48 = arith.constant 8 : index
    %94 = vector.load %arg5[%c0_47, %c8_48] : memref<2x88xf32, #tpu.memory_space<vmem>>, vector<2x8xf32>
    tpu.vector_store %arg5[%c0_47, %c8_48], %93 {strides = array<i32>} : memref<2x88xf32, #tpu.memory_space<vmem>>, vector<2x8xf32>,
    %c0_49 = arith.constant 0 : index
    %c0_50 = arith.constant 0 : index
    %95 = vector.load %arg5[%c0_49, %c0_50] : memref<2x88xf32, #tpu.memory_space<vmem>>, vector<2x88xf32>
    %c0_51 = arith.constant 0 : index
    %c0_52 = arith.constant 0 : index
    %96 = vector.load %arg1[%c0_51, %c0_52] : memref<88x256xf32, #tpu.memory_space<vmem>>, vector<88x256xf32>
    %cst_53 = arith.constant dense<0.000000e+00> : vector<2x256xf32>
    %97 = tpu.matmul %95, %96, %cst_53 {dimension_numbers = #tpu.dot_dimension_numbers<[1], [0], [0], [1], [0, 0, 1, 1], [], []>} : vector<2x88xf32>, vector<88x256xf32>, vector<2x256xf32> -> vector<2x256xf32>
    %98 = vector.extract_strided_slice %97 {offsets = [0, 0], sizes = [2, 128], strides = [1, 1]} : vector<2x256xf32> to vector<2x128xf32>
    %c0_54 = arith.constant 0 : index
    %c0_55 = arith.constant 0 : index
    %99 = vector.load %arg6[%c0_54, %c0_55] : memref<2x32xf32, #tpu.memory_space<vmem>>, vector<2x32xf32>
    %100 = vector.extract_strided_slice %98 {offsets = [0, 0], sizes = [2, 32], strides = [1, 1]} : vector<2x128xf32> to vector<2x32xf32>
    %101 = arith.negf %100 : vector<2x32xf32>
    %102 = math.exp %101 : vector<2x32xf32>
    %cst_56 = arith.constant 1.000000e+00 : f32
    %103 = vector.broadcast %cst_56 : f32 to vector<2x32xf32>
    %104 = arith.addf %103, %102 : vector<2x32xf32>
    %105 = arith.divf %103, %104 : vector<2x32xf32>
    %106 = vector.extract_strided_slice %98 {offsets = [0, 32], sizes = [2, 32], strides = [1, 1]} : vector<2x128xf32> to vector<2x32xf32>
    %107 = arith.negf %106 : vector<2x32xf32>
    %108 = math.exp %107 : vector<2x32xf32>
    %cst_57 = arith.constant 1.000000e+00 : f32
    %109 = vector.broadcast %cst_57 : f32 to vector<2x32xf32>
    %110 = arith.addf %109, %108 : vector<2x32xf32>
    %111 = arith.divf %109, %110 : vector<2x32xf32>
    %112 = vector.extract_strided_slice %98 {offsets = [0, 64], sizes = [2, 32], strides = [1, 1]} : vector<2x128xf32> to vector<2x32xf32>
    %113 = math.tanh %112 : vector<2x32xf32>
    %114 = vector.extract_strided_slice %98 {offsets = [0, 96], sizes = [2, 32], strides = [1, 1]} : vector<2x128xf32> to vector<2x32xf32>
    %115 = arith.negf %114 : vector<2x32xf32>
    %116 = math.exp %115 : vector<2x32xf32>
    %cst_58 = arith.constant 1.000000e+00 : f32
    %117 = vector.broadcast %cst_58 : f32 to vector<2x32xf32>
    %118 = arith.addf %117, %116 : vector<2x32xf32>
    %119 = arith.divf %117, %118 : vector<2x32xf32>
    %120 = arith.mulf %111, %99 : vector<2x32xf32>
    %121 = arith.mulf %105, %113 : vector<2x32xf32>
    %122 = arith.addf %120, %121 : vector<2x32xf32>
    %123 = math.tanh %122 : vector<2x32xf32>
    %124 = arith.mulf %119, %123 : vector<2x32xf32>
    %125 = vector.extract_strided_slice %97 {offsets = [0, 128], sizes = [2, 128], strides = [1, 1]} : vector<2x256xf32> to vector<2x128xf32>
    %c0_59 = arith.constant 0 : index
    %c0_60 = arith.constant 0 : index
    %126 = vector.load %arg7[%c0_59, %c0_60] : memref<2x32xf32, #tpu.memory_space<vmem>>, vector<2x32xf32>
    %127 = vector.extract_strided_slice %125 {offsets = [0, 0], sizes = [2, 32], strides = [1, 1]} : vector<2x128xf32> to vector<2x32xf32>
    %128 = arith.negf %127 : vector<2x32xf32>
    %129 = math.exp %128 : vector<2x32xf32>
    %cst_61 = arith.constant 1.000000e+00 : f32
    %130 = vector.broadcast %cst_61 : f32 to vector<2x32xf32>
    %131 = arith.addf %130, %129 : vector<2x32xf32>
    %132 = arith.divf %130, %131 : vector<2x32xf32>
    %133 = vector.extract_strided_slice %125 {offsets = [0, 32], sizes = [2, 32], strides = [1, 1]} : vector<2x128xf32> to vector<2x32xf32>
    %134 = arith.negf %133 : vector<2x32xf32>
    %135 = math.exp %134 : vector<2x32xf32>
    %cst_62 = arith.constant 1.000000e+00 : f32
    %136 = vector.broadcast %cst_62 : f32 to vector<2x32xf32>
    %137 = arith.addf %136, %135 : vector<2x32xf32>
    %138 = arith.divf %136, %137 : vector<2x32xf32>
    %139 = vector.extract_strided_slice %125 {offsets = [0, 64], sizes = [2, 32], strides = [1, 1]} : vector<2x128xf32> to vector<2x32xf32>
    %140 = math.tanh %139 : vector<2x32xf32>
    %141 = vector.extract_strided_slice %125 {offsets = [0, 96], sizes = [2, 32], strides = [1, 1]} : vector<2x128xf32> to vector<2x32xf32>
    %142 = arith.negf %141 : vector<2x32xf32>
    %143 = math.exp %142 : vector<2x32xf32>
    %cst_63 = arith.constant 1.000000e+00 : f32
    %144 = vector.broadcast %cst_63 : f32 to vector<2x32xf32>
    %145 = arith.addf %144, %143 : vector<2x32xf32>
    %146 = arith.divf %144, %145 : vector<2x32xf32>
    %147 = arith.mulf %138, %126 : vector<2x32xf32>
    %148 = arith.mulf %132, %140 : vector<2x32xf32>
    %149 = arith.addf %147, %148 : vector<2x32xf32>
    %150 = math.tanh %149 : vector<2x32xf32>
    %151 = arith.mulf %146, %150 : vector<2x32xf32>
    %c0_64 = arith.constant 0 : index
    %c16_65 = arith.constant 16 : index
    %152 = vector.load %arg5[%c0_64, %c16_65] : memref<2x88xf32, #tpu.memory_space<vmem>>, vector<2x32xf32>
    tpu.vector_store %arg5[%c0_64, %c16_65], %124 {strides = array<i32>} : memref<2x88xf32, #tpu.memory_space<vmem>>, vector<2x32xf32>,
    %c0_66 = arith.constant 0 : index
    %c48_67 = arith.constant 48 : index
    %153 = vector.load %arg5[%c0_66, %c48_67] : memref<2x88xf32, #tpu.memory_space<vmem>>, vector<2x32xf32>
    tpu.vector_store %arg5[%c0_66, %c48_67], %151 {strides = array<i32>} : memref<2x88xf32, #tpu.memory_space<vmem>>, vector<2x32xf32>,
    %c0_68 = arith.constant 0 : index
    %c0_69 = arith.constant 0 : index
    %154 = vector.load %arg6[%c0_68, %c0_69] : memref<2x32xf32, #tpu.memory_space<vmem>>, vector<2x32xf32>
    tpu.vector_store %arg6[%c0_68, %c0_69], %122 {strides = array<i32>} : memref<2x32xf32, #tpu.memory_space<vmem>>, vector<2x32xf32>,
    %c0_70 = arith.constant 0 : index
    %c0_71 = arith.constant 0 : index
    %155 = vector.load %arg7[%c0_70, %c0_71] : memref<2x32xf32, #tpu.memory_space<vmem>>, vector<2x32xf32>
    tpu.vector_store %arg7[%c0_70, %c0_71], %149 {strides = array<i32>} : memref<2x32xf32, #tpu.memory_space<vmem>>, vector<2x32xf32>,
    %156 = arith.index_cast %c1_i32 : i32 to index
    %c0_72 = arith.constant 0 : index
    %c0_73 = arith.constant 0 : index
    %157 = vector.load %arg2[%156, %c0_72, %c0_73] : memref<8x2x64xf32, #tpu.memory_space<vmem>>, vector<1x2x32xf32>
    %158 = vector.shape_cast %157 : vector<1x2x32xf32> to vector<2x32xf32>
    %159 = vector.shape_cast %124 : vector<2x32xf32> to vector<1x2x32xf32>
    tpu.vector_store %arg2[%156, %c0_72, %c0_73], %159 {strides = array<i32>} : memref<8x2x64xf32, #tpu.memory_space<vmem>>, vector<1x2x32xf32>,
    %160 = arith.index_cast %86 : i32 to index
    %c0_74 = arith.constant 0 : index
    %c32_75 = arith.constant 32 : index
    %161 = vector.load %arg2[%160, %c0_74, %c32_75] : memref<8x2x64xf32, #tpu.memory_space<vmem>>, vector<1x2x32xf32>
    %162 = vector.shape_cast %161 : vector<1x2x32xf32> to vector<2x32xf32>
    %163 = vector.shape_cast %151 : vector<2x32xf32> to vector<1x2x32xf32>
    tpu.vector_store %arg2[%160, %c0_74, %c32_75], %163 {strides = array<i32>} : memref<8x2x64xf32, #tpu.memory_space<vmem>>, vector<1x2x32xf32>,
    %c2_i32 = arith.constant 2 : i32
    %c7_i32_76 = arith.constant 7 : i32
    %164 = arith.subi %c7_i32_76, %c2_i32 : i32
    %165 = arith.index_cast %c2_i32 : i32 to index
    %c0_77 = arith.constant 0 : index
    %c0_78 = arith.constant 0 : index
    %166 = vector.load %arg0[%165, %c0_77, %c0_78] : memref<8x2x8xf32, #tpu.memory_space<vmem>>, vector<1x2x8xf32>
    %167 = vector.shape_cast %166 : vector<1x2x8xf32> to vector<2x8xf32>
    %c0_79 = arith.constant 0 : index
    %c0_80 = arith.constant 0 : index
    %168 = vector.load %arg5[%c0_79, %c0_80] : memref<2x88xf32, #tpu.memory_space<vmem>>, vector<2x8xf32>
    tpu.vector_store %arg5[%c0_79, %c0_80], %167 {strides = array<i32>} : memref<2x88xf32, #tpu.memory_space<vmem>>, vector<2x8xf32>,
    %169 = arith.index_cast %164 : i32 to index
    %c0_81 = arith.constant 0 : index
    %c0_82 = arith.constant 0 : index
    %170 = vector.load %arg0[%169, %c0_81, %c0_82] : memref<8x2x8xf32, #tpu.memory_space<vmem>>, vector<1x2x8xf32>
    %171 = vector.shape_cast %170 : vector<1x2x8xf32> to vector<2x8xf32>
    %c0_83 = arith.constant 0 : index
    %c8_84 = arith.constant 8 : index
    %172 = vector.load %arg5[%c0_83, %c8_84] : memref<2x88xf32, #tpu.memory_space<vmem>>, vector<2x8xf32>
    tpu.vector_store %arg5[%c0_83, %c8_84], %171 {strides = array<i32>} : memref<2x88xf32, #tpu.memory_space<vmem>>, vector<2x8xf32>,
    %c0_85 = arith.constant 0 : index
    %c0_86 = arith.constant 0 : index
    %173 = vector.load %arg5[%c0_85, %c0_86] : memref<2x88xf32, #tpu.memory_space<vmem>>, vector<2x88xf32>
    %c0_87 = arith.constant 0 : index
    %c0_88 = arith.constant 0 : index
    %174 = vector.load %arg1[%c0_87, %c0_88] : memref<88x256xf32, #tpu.memory_space<vmem>>, vector<88x256xf32>
    %cst_89 = arith.constant dense<0.000000e+00> : vector<2x256xf32>
    %175 = tpu.matmul %173, %174, %cst_89 {dimension_numbers = #tpu.dot_dimension_numbers<[1], [0], [0], [1], [0, 0, 1, 1], [], []>} : vector<2x88xf32>, vector<88x256xf32>, vector<2x256xf32> -> vector<2x256xf32>
    %176 = vector.extract_strided_slice %175 {offsets = [0, 0], sizes = [2, 128], strides = [1, 1]} : vector<2x256xf32> to vector<2x128xf32>
    %c0_90 = arith.constant 0 : index
    %c0_91 = arith.constant 0 : index
    %177 = vector.load %arg6[%c0_90, %c0_91] : memref<2x32xf32, #tpu.memory_space<vmem>>, vector<2x32xf32>
    %178 = vector.extract_strided_slice %176 {offsets = [0, 0], sizes = [2, 32], strides = [1, 1]} : vector<2x128xf32> to vector<2x32xf32>
    %179 = arith.negf %178 : vector<2x32xf32>
    %180 = math.exp %179 : vector<2x32xf32>
    %cst_92 = arith.constant 1.000000e+00 : f32
    %181 = vector.broadcast %cst_92 : f32 to vector<2x32xf32>
    %182 = arith.addf %181, %180 : vector<2x32xf32>
    %183 = arith.divf %181, %182 : vector<2x32xf32>
    %184 = vector.extract_strided_slice %176 {offsets = [0, 32], sizes = [2, 32], strides = [1, 1]} : vector<2x128xf32> to vector<2x32xf32>
    %185 = arith.negf %184 : vector<2x32xf32>
    %186 = math.exp %185 : vector<2x32xf32>
    %cst_93 = arith.constant 1.000000e+00 : f32
    %187 = vector.broadcast %cst_93 : f32 to vector<2x32xf32>
    %188 = arith.addf %187, %186 : vector<2x32xf32>
    %189 = arith.divf %187, %188 : vector<2x32xf32>
    %190 = vector.extract_strided_slice %176 {offsets = [0, 64], sizes = [2, 32], strides = [1, 1]} : vector<2x128xf32> to vector<2x32xf32>
    %191 = math.tanh %190 : vector<2x32xf32>
    %192 = vector.extract_strided_slice %176 {offsets = [0, 96], sizes = [2, 32], strides = [1, 1]} : vector<2x128xf32> to vector<2x32xf32>
    %193 = arith.negf %192 : vector<2x32xf32>
    %194 = math.exp %193 : vector<2x32xf32>
    %cst_94 = arith.constant 1.000000e+00 : f32
    %195 = vector.broadcast %cst_94 : f32 to vector<2x32xf32>
    %196 = arith.addf %195, %194 : vector<2x32xf32>
    %197 = arith.divf %195, %196 : vector<2x32xf32>
    %198 = arith.mulf %189, %177 : vector<2x32xf32>
    %199 = arith.mulf %183, %191 : vector<2x32xf32>
    %200 = arith.addf %198, %199 : vector<2x32xf32>
    %201 = math.tanh %200 : vector<2x32xf32>
    %202 = arith.mulf %197, %201 : vector<2x32xf32>
    %203 = vector.extract_strided_slice %175 {offsets = [0, 128], sizes = [2, 128], strides = [1, 1]} : vector<2x256xf32> to vector<2x128xf32>
    %c0_95 = arith.constant 0 : index
    %c0_96 = arith.constant 0 : index
    %204 = vector.load %arg7[%c0_95, %c0_96] : memref<2x32xf32, #tpu.memory_space<vmem>>, vector<2x32xf32>
    %205 = vector.extract_strided_slice %203 {offsets = [0, 0], sizes = [2, 32], strides = [1, 1]} : vector<2x128xf32> to vector<2x32xf32>
    %206 = arith.negf %205 : vector<2x32xf32>
    %207 = math.exp %206 : vector<2x32xf32>
    %cst_97 = arith.constant 1.000000e+00 : f32
    %208 = vector.broadcast %cst_97 : f32 to vector<2x32xf32>
    %209 = arith.addf %208, %207 : vector<2x32xf32>
    %210 = arith.divf %208, %209 : vector<2x32xf32>
    %211 = vector.extract_strided_slice %203 {offsets = [0, 32], sizes = [2, 32], strides = [1, 1]} : vector<2x128xf32> to vector<2x32xf32>
    %212 = arith.negf %211 : vector<2x32xf32>
    %213 = math.exp %212 : vector<2x32xf32>
    %cst_98 = arith.constant 1.000000e+00 : f32
    %214 = vector.broadcast %cst_98 : f32 to vector<2x32xf32>
    %215 = arith.addf %214, %213 : vector<2x32xf32>
    %216 = arith.divf %214, %215 : vector<2x32xf32>
    %217 = vector.extract_strided_slice %203 {offsets = [0, 64], sizes = [2, 32], strides = [1, 1]} : vector<2x128xf32> to vector<2x32xf32>
    %218 = math.tanh %217 : vector<2x32xf32>
    %219 = vector.extract_strided_slice %203 {offsets = [0, 96], sizes = [2, 32], strides = [1, 1]} : vector<2x128xf32> to vector<2x32xf32>
    %220 = arith.negf %219 : vector<2x32xf32>
    %221 = math.exp %220 : vector<2x32xf32>
    %cst_99 = arith.constant 1.000000e+00 : f32
    %222 = vector.broadcast %cst_99 : f32 to vector<2x32xf32>
    %223 = arith.addf %222, %221 : vector<2x32xf32>
    %224 = arith.divf %222, %223 : vector<2x32xf32>
    %225 = arith.mulf %216, %204 : vector<2x32xf32>
    %226 = arith.mulf %210, %218 : vector<2x32xf32>
    %227 = arith.addf %225, %226 : vector<2x32xf32>
    %228 = math.tanh %227 : vector<2x32xf32>
    %229 = arith.mulf %224, %228 : vector<2x32xf32>
    %c0_100 = arith.constant 0 : index
    %c16_101 = arith.constant 16 : index
    %230 = vector.load %arg5[%c0_100, %c16_101] : memref<2x88xf32, #tpu.memory_space<vmem>>, vector<2x32xf32>
    tpu.vector_store %arg5[%c0_100, %c16_101], %202 {strides = array<i32>} : memref<2x88xf32, #tpu.memory_space<vmem>>, vector<2x32xf32>,
    %c0_102 = arith.constant 0 : index
    %c48_103 = arith.constant 48 : index
    %231 = vector.load %arg5[%c0_102, %c48_103] : memref<2x88xf32, #tpu.memory_space<vmem>>, vector<2x32xf32>
    tpu.vector_store %arg5[%c0_102, %c48_103], %229 {strides = array<i32>} : memref<2x88xf32, #tpu.memory_space<vmem>>, vector<2x32xf32>,
    %c0_104 = arith.constant 0 : index
    %c0_105 = arith.constant 0 : index
    %232 = vector.load %arg6[%c0_104, %c0_105] : memref<2x32xf32, #tpu.memory_space<vmem>>, vector<2x32xf32>
    tpu.vector_store %arg6[%c0_104, %c0_105], %200 {strides = array<i32>} : memref<2x32xf32, #tpu.memory_space<vmem>>, vector<2x32xf32>,
    %c0_106 = arith.constant 0 : index
    %c0_107 = arith.constant 0 : index
    %233 = vector.load %arg7[%c0_106, %c0_107] : memref<2x32xf32, #tpu.memory_space<vmem>>, vector<2x32xf32>
    tpu.vector_store %arg7[%c0_106, %c0_107], %227 {strides = array<i32>} : memref<2x32xf32, #tpu.memory_space<vmem>>, vector<2x32xf32>,
    %234 = arith.index_cast %c2_i32 : i32 to index
    %c0_108 = arith.constant 0 : index
    %c0_109 = arith.constant 0 : index
    %235 = vector.load %arg2[%234, %c0_108, %c0_109] : memref<8x2x64xf32, #tpu.memory_space<vmem>>, vector<1x2x32xf32>
    %236 = vector.shape_cast %235 : vector<1x2x32xf32> to vector<2x32xf32>
    %237 = vector.shape_cast %202 : vector<2x32xf32> to vector<1x2x32xf32>
    tpu.vector_store %arg2[%234, %c0_108, %c0_109], %237 {strides = array<i32>} : memref<8x2x64xf32, #tpu.memory_space<vmem>>, vector<1x2x32xf32>,
    %238 = arith.index_cast %164 : i32 to index
    %c0_110 = arith.constant 0 : index
    %c32_111 = arith.constant 32 : index
    %239 = vector.load %arg2[%238, %c0_110, %c32_111] : memref<8x2x64xf32, #tpu.memory_space<vmem>>, vector<1x2x32xf32>
    %240 = vector.shape_cast %239 : vector<1x2x32xf32> to vector<2x32xf32>
    %241 = vector.shape_cast %229 : vector<2x32xf32> to vector<1x2x32xf32>
    tpu.vector_store %arg2[%238, %c0_110, %c32_111], %241 {strides = array<i32>} : memref<8x2x64xf32, #tpu.memory_space<vmem>>, vector<1x2x32xf32>,
    %c3_i32 = arith.constant 3 : i32
    %c7_i32_112 = arith.constant 7 : i32
    %242 = arith.subi %c7_i32_112, %c3_i32 : i32
    %243 = arith.index_cast %c3_i32 : i32 to index
    %c0_113 = arith.constant 0 : index
    %c0_114 = arith.constant 0 : index
    %244 = vector.load %arg0[%243, %c0_113, %c0_114] : memref<8x2x8xf32, #tpu.memory_space<vmem>>, vector<1x2x8xf32>
    %245 = vector.shape_cast %244 : vector<1x2x8xf32> to vector<2x8xf32>
    %c0_115 = arith.constant 0 : index
    %c0_116 = arith.constant 0 : index
    %246 = vector.load %arg5[%c0_115, %c0_116] : memref<2x88xf32, #tpu.memory_space<vmem>>, vector<2x8xf32>
    tpu.vector_store %arg5[%c0_115, %c0_116], %245 {strides = array<i32>} : memref<2x88xf32, #tpu.memory_space<vmem>>, vector<2x8xf32>,
    %247 = arith.index_cast %242 : i32 to index
    %c0_117 = arith.constant 0 : index
    %c0_118 = arith.constant 0 : index
    %248 = vector.load %arg0[%247, %c0_117, %c0_118] : memref<8x2x8xf32, #tpu.memory_space<vmem>>, vector<1x2x8xf32>
    %249 = vector.shape_cast %248 : vector<1x2x8xf32> to vector<2x8xf32>
    %c0_119 = arith.constant 0 : index
    %c8_120 = arith.constant 8 : index
    %250 = vector.load %arg5[%c0_119, %c8_120] : memref<2x88xf32, #tpu.memory_space<vmem>>, vector<2x8xf32>
    tpu.vector_store %arg5[%c0_119, %c8_120], %249 {strides = array<i32>} : memref<2x88xf32, #tpu.memory_space<vmem>>, vector<2x8xf32>,
    %c0_121 = arith.constant 0 : index
    %c0_122 = arith.constant 0 : index
    %251 = vector.load %arg5[%c0_121, %c0_122] : memref<2x88xf32, #tpu.memory_space<vmem>>, vector<2x88xf32>
    %c0_123 = arith.constant 0 : index
    %c0_124 = arith.constant 0 : index
    %252 = vector.load %arg1[%c0_123, %c0_124] : memref<88x256xf32, #tpu.memory_space<vmem>>, vector<88x256xf32>
    %cst_125 = arith.constant dense<0.000000e+00> : vector<2x256xf32>
    %253 = tpu.matmul %251, %252, %cst_125 {dimension_numbers = #tpu.dot_dimension_numbers<[1], [0], [0], [1], [0, 0, 1, 1], [], []>} : vector<2x88xf32>, vector<88x256xf32>, vector<2x256xf32> -> vector<2x256xf32>
    %254 = vector.extract_strided_slice %253 {offsets = [0, 0], sizes = [2, 128], strides = [1, 1]} : vector<2x256xf32> to vector<2x128xf32>
    %c0_126 = arith.constant 0 : index
    %c0_127 = arith.constant 0 : index
    %255 = vector.load %arg6[%c0_126, %c0_127] : memref<2x32xf32, #tpu.memory_space<vmem>>, vector<2x32xf32>
    %256 = vector.extract_strided_slice %254 {offsets = [0, 0], sizes = [2, 32], strides = [1, 1]} : vector<2x128xf32> to vector<2x32xf32>
    %257 = arith.negf %256 : vector<2x32xf32>
    %258 = math.exp %257 : vector<2x32xf32>
    %cst_128 = arith.constant 1.000000e+00 : f32
    %259 = vector.broadcast %cst_128 : f32 to vector<2x32xf32>
    %260 = arith.addf %259, %258 : vector<2x32xf32>
    %261 = arith.divf %259, %260 : vector<2x32xf32>
    %262 = vector.extract_strided_slice %254 {offsets = [0, 32], sizes = [2, 32], strides = [1, 1]} : vector<2x128xf32> to vector<2x32xf32>
    %263 = arith.negf %262 : vector<2x32xf32>
    %264 = math.exp %263 : vector<2x32xf32>
    %cst_129 = arith.constant 1.000000e+00 : f32
    %265 = vector.broadcast %cst_129 : f32 to vector<2x32xf32>
    %266 = arith.addf %265, %264 : vector<2x32xf32>
    %267 = arith.divf %265, %266 : vector<2x32xf32>
    %268 = vector.extract_strided_slice %254 {offsets = [0, 64], sizes = [2, 32], strides = [1, 1]} : vector<2x128xf32> to vector<2x32xf32>
    %269 = math.tanh %268 : vector<2x32xf32>
    %270 = vector.extract_strided_slice %254 {offsets = [0, 96], sizes = [2, 32], strides = [1, 1]} : vector<2x128xf32> to vector<2x32xf32>
    %271 = arith.negf %270 : vector<2x32xf32>
    %272 = math.exp %271 : vector<2x32xf32>
    %cst_130 = arith.constant 1.000000e+00 : f32
    %273 = vector.broadcast %cst_130 : f32 to vector<2x32xf32>
    %274 = arith.addf %273, %272 : vector<2x32xf32>
    %275 = arith.divf %273, %274 : vector<2x32xf32>
    %276 = arith.mulf %267, %255 : vector<2x32xf32>
    %277 = arith.mulf %261, %269 : vector<2x32xf32>
    %278 = arith.addf %276, %277 : vector<2x32xf32>
    %279 = math.tanh %278 : vector<2x32xf32>
    %280 = arith.mulf %275, %279 : vector<2x32xf32>
    %281 = vector.extract_strided_slice %253 {offsets = [0, 128], sizes = [2, 128], strides = [1, 1]} : vector<2x256xf32> to vector<2x128xf32>
    %c0_131 = arith.constant 0 : index
    %c0_132 = arith.constant 0 : index
    %282 = vector.load %arg7[%c0_131, %c0_132] : memref<2x32xf32, #tpu.memory_space<vmem>>, vector<2x32xf32>
    %283 = vector.extract_strided_slice %281 {offsets = [0, 0], sizes = [2, 32], strides = [1, 1]} : vector<2x128xf32> to vector<2x32xf32>
    %284 = arith.negf %283 : vector<2x32xf32>
    %285 = math.exp %284 : vector<2x32xf32>
    %cst_133 = arith.constant 1.000000e+00 : f32
    %286 = vector.broadcast %cst_133 : f32 to vector<2x32xf32>
    %287 = arith.addf %286, %285 : vector<2x32xf32>
    %288 = arith.divf %286, %287 : vector<2x32xf32>
    %289 = vector.extract_strided_slice %281 {offsets = [0, 32], sizes = [2, 32], strides = [1, 1]} : vector<2x128xf32> to vector<2x32xf32>
    %290 = arith.negf %289 : vector<2x32xf32>
    %291 = math.exp %290 : vector<2x32xf32>
    %cst_134 = arith.constant 1.000000e+00 : f32
    %292 = vector.broadcast %cst_134 : f32 to vector<2x32xf32>
    %293 = arith.addf %292, %291 : vector<2x32xf32>
    %294 = arith.divf %292, %293 : vector<2x32xf32>
    %295 = vector.extract_strided_slice %281 {offsets = [0, 64], sizes = [2, 32], strides = [1, 1]} : vector<2x128xf32> to vector<2x32xf32>
    %296 = math.tanh %295 : vector<2x32xf32>
    %297 = vector.extract_strided_slice %281 {offsets = [0, 96], sizes = [2, 32], strides = [1, 1]} : vector<2x128xf32> to vector<2x32xf32>
    %298 = arith.negf %297 : vector<2x32xf32>
    %299 = math.exp %298 : vector<2x32xf32>
    %cst_135 = arith.constant 1.000000e+00 : f32
    %300 = vector.broadcast %cst_135 : f32 to vector<2x32xf32>
    %301 = arith.addf %300, %299 : vector<2x32xf32>
    %302 = arith.divf %300, %301 : vector<2x32xf32>
    %303 = arith.mulf %294, %282 : vector<2x32xf32>
    %304 = arith.mulf %288, %296 : vector<2x32xf32>
    %305 = arith.addf %303, %304 : vector<2x32xf32>
    %306 = math.tanh %305 : vector<2x32xf32>
    %307 = arith.mulf %302, %306 : vector<2x32xf32>
    %c0_136 = arith.constant 0 : index
    %c16_137 = arith.constant 16 : index
    %308 = vector.load %arg5[%c0_136, %c16_137] : memref<2x88xf32, #tpu.memory_space<vmem>>, vector<2x32xf32>
    tpu.vector_store %arg5[%c0_136, %c16_137], %280 {strides = array<i32>} : memref<2x88xf32, #tpu.memory_space<vmem>>, vector<2x32xf32>,
    %c0_138 = arith.constant 0 : index
    %c48_139 = arith.constant 48 : index
    %309 = vector.load %arg5[%c0_138, %c48_139] : memref<2x88xf32, #tpu.memory_space<vmem>>, vector<2x32xf32>
    tpu.vector_store %arg5[%c0_138, %c48_139], %307 {strides = array<i32>} : memref<2x88xf32, #tpu.memory_space<vmem>>, vector<2x32xf32>,
    %c0_140 = arith.constant 0 : index
    %c0_141 = arith.constant 0 : index
    %310 = vector.load %arg6[%c0_140, %c0_141] : memref<2x32xf32, #tpu.memory_space<vmem>>, vector<2x32xf32>
    tpu.vector_store %arg6[%c0_140, %c0_141], %278 {strides = array<i32>} : memref<2x32xf32, #tpu.memory_space<vmem>>, vector<2x32xf32>,
    %c0_142 = arith.constant 0 : index
    %c0_143 = arith.constant 0 : index
    %311 = vector.load %arg7[%c0_142, %c0_143] : memref<2x32xf32, #tpu.memory_space<vmem>>, vector<2x32xf32>
    tpu.vector_store %arg7[%c0_142, %c0_143], %305 {strides = array<i32>} : memref<2x32xf32, #tpu.memory_space<vmem>>, vector<2x32xf32>,
    %312 = arith.index_cast %c3_i32 : i32 to index
    %c0_144 = arith.constant 0 : index
    %c0_145 = arith.constant 0 : index
    %313 = vector.load %arg2[%312, %c0_144, %c0_145] : memref<8x2x64xf32, #tpu.memory_space<vmem>>, vector<1x2x32xf32>
    %314 = vector.shape_cast %313 : vector<1x2x32xf32> to vector<2x32xf32>
    %315 = vector.shape_cast %280 : vector<2x32xf32> to vector<1x2x32xf32>
    tpu.vector_store %arg2[%312, %c0_144, %c0_145], %315 {strides = array<i32>} : memref<8x2x64xf32, #tpu.memory_space<vmem>>, vector<1x2x32xf32>,
    %316 = arith.index_cast %242 : i32 to index
    %c0_146 = arith.constant 0 : index
    %c32_147 = arith.constant 32 : index
    %317 = vector.load %arg2[%316, %c0_146, %c32_147] : memref<8x2x64xf32, #tpu.memory_space<vmem>>, vector<1x2x32xf32>
    %318 = vector.shape_cast %317 : vector<1x2x32xf32> to vector<2x32xf32>
    %319 = vector.shape_cast %307 : vector<2x32xf32> to vector<1x2x32xf32>
    tpu.vector_store %arg2[%316, %c0_146, %c32_147], %319 {strides = array<i32>} : memref<8x2x64xf32, #tpu.memory_space<vmem>>, vector<1x2x32xf32>,
    %c4_i32 = arith.constant 4 : i32
    %c7_i32_148 = arith.constant 7 : i32
    %320 = arith.subi %c7_i32_148, %c4_i32 : i32
    %321 = arith.index_cast %c4_i32 : i32 to index
    %c0_149 = arith.constant 0 : index
    %c0_150 = arith.constant 0 : index
    %322 = vector.load %arg0[%321, %c0_149, %c0_150] : memref<8x2x8xf32, #tpu.memory_space<vmem>>, vector<1x2x8xf32>
    %323 = vector.shape_cast %322 : vector<1x2x8xf32> to vector<2x8xf32>
    %c0_151 = arith.constant 0 : index
    %c0_152 = arith.constant 0 : index
    %324 = vector.load %arg5[%c0_151, %c0_152] : memref<2x88xf32, #tpu.memory_space<vmem>>, vector<2x8xf32>
    tpu.vector_store %arg5[%c0_151, %c0_152], %323 {strides = array<i32>} : memref<2x88xf32, #tpu.memory_space<vmem>>, vector<2x8xf32>,
    %325 = arith.index_cast %320 : i32 to index
    %c0_153 = arith.constant 0 : index
    %c0_154 = arith.constant 0 : index
    %326 = vector.load %arg0[%325, %c0_153, %c0_154] : memref<8x2x8xf32, #tpu.memory_space<vmem>>, vector<1x2x8xf32>
    %327 = vector.shape_cast %326 : vector<1x2x8xf32> to vector<2x8xf32>
    %c0_155 = arith.constant 0 : index
    %c8_156 = arith.constant 8 : index
    %328 = vector.load %arg5[%c0_155, %c8_156] : memref<2x88xf32, #tpu.memory_space<vmem>>, vector<2x8xf32>
    tpu.vector_store %arg5[%c0_155, %c8_156], %327 {strides = array<i32>} : memref<2x88xf32, #tpu.memory_space<vmem>>, vector<2x8xf32>,
    %c0_157 = arith.constant 0 : index
    %c0_158 = arith.constant 0 : index
    %329 = vector.load %arg5[%c0_157, %c0_158] : memref<2x88xf32, #tpu.memory_space<vmem>>, vector<2x88xf32>
    %c0_159 = arith.constant 0 : index
    %c0_160 = arith.constant 0 : index
    %330 = vector.load %arg1[%c0_159, %c0_160] : memref<88x256xf32, #tpu.memory_space<vmem>>, vector<88x256xf32>
    %cst_161 = arith.constant dense<0.000000e+00> : vector<2x256xf32>
    %331 = tpu.matmul %329, %330, %cst_161 {dimension_numbers = #tpu.dot_dimension_numbers<[1], [0], [0], [1], [0, 0, 1, 1], [], []>} : vector<2x88xf32>, vector<88x256xf32>, vector<2x256xf32> -> vector<2x256xf32>
    %332 = vector.extract_strided_slice %331 {offsets = [0, 0], sizes = [2, 128], strides = [1, 1]} : vector<2x256xf32> to vector<2x128xf32>
    %c0_162 = arith.constant 0 : index
    %c0_163 = arith.constant 0 : index
    %333 = vector.load %arg6[%c0_162, %c0_163] : memref<2x32xf32, #tpu.memory_space<vmem>>, vector<2x32xf32>
    %334 = vector.extract_strided_slice %332 {offsets = [0, 0], sizes = [2, 32], strides = [1, 1]} : vector<2x128xf32> to vector<2x32xf32>
    %335 = arith.negf %334 : vector<2x32xf32>
    %336 = math.exp %335 : vector<2x32xf32>
    %cst_164 = arith.constant 1.000000e+00 : f32
    %337 = vector.broadcast %cst_164 : f32 to vector<2x32xf32>
    %338 = arith.addf %337, %336 : vector<2x32xf32>
    %339 = arith.divf %337, %338 : vector<2x32xf32>
    %340 = vector.extract_strided_slice %332 {offsets = [0, 32], sizes = [2, 32], strides = [1, 1]} : vector<2x128xf32> to vector<2x32xf32>
    %341 = arith.negf %340 : vector<2x32xf32>
    %342 = math.exp %341 : vector<2x32xf32>
    %cst_165 = arith.constant 1.000000e+00 : f32
    %343 = vector.broadcast %cst_165 : f32 to vector<2x32xf32>
    %344 = arith.addf %343, %342 : vector<2x32xf32>
    %345 = arith.divf %343, %344 : vector<2x32xf32>
    %346 = vector.extract_strided_slice %332 {offsets = [0, 64], sizes = [2, 32], strides = [1, 1]} : vector<2x128xf32> to vector<2x32xf32>
    %347 = math.tanh %346 : vector<2x32xf32>
    %348 = vector.extract_strided_slice %332 {offsets = [0, 96], sizes = [2, 32], strides = [1, 1]} : vector<2x128xf32> to vector<2x32xf32>
    %349 = arith.negf %348 : vector<2x32xf32>
    %350 = math.exp %349 : vector<2x32xf32>
    %cst_166 = arith.constant 1.000000e+00 : f32
    %351 = vector.broadcast %cst_166 : f32 to vector<2x32xf32>
    %352 = arith.addf %351, %350 : vector<2x32xf32>
    %353 = arith.divf %351, %352 : vector<2x32xf32>
    %354 = arith.mulf %345, %333 : vector<2x32xf32>
    %355 = arith.mulf %339, %347 : vector<2x32xf32>
    %356 = arith.addf %354, %355 : vector<2x32xf32>
    %357 = math.tanh %356 : vector<2x32xf32>
    %358 = arith.mulf %353, %357 : vector<2x32xf32>
    %359 = vector.extract_strided_slice %331 {offsets = [0, 128], sizes = [2, 128], strides = [1, 1]} : vector<2x256xf32> to vector<2x128xf32>
    %c0_167 = arith.constant 0 : index
    %c0_168 = arith.constant 0 : index
    %360 = vector.load %arg7[%c0_167, %c0_168] : memref<2x32xf32, #tpu.memory_space<vmem>>, vector<2x32xf32>
    %361 = vector.extract_strided_slice %359 {offsets = [0, 0], sizes = [2, 32], strides = [1, 1]} : vector<2x128xf32> to vector<2x32xf32>
    %362 = arith.negf %361 : vector<2x32xf32>
    %363 = math.exp %362 : vector<2x32xf32>
    %cst_169 = arith.constant 1.000000e+00 : f32
    %364 = vector.broadcast %cst_169 : f32 to vector<2x32xf32>
    %365 = arith.addf %364, %363 : vector<2x32xf32>
    %366 = arith.divf %364, %365 : vector<2x32xf32>
    %367 = vector.extract_strided_slice %359 {offsets = [0, 32], sizes = [2, 32], strides = [1, 1]} : vector<2x128xf32> to vector<2x32xf32>
    %368 = arith.negf %367 : vector<2x32xf32>
    %369 = math.exp %368 : vector<2x32xf32>
    %cst_170 = arith.constant 1.000000e+00 : f32
    %370 = vector.broadcast %cst_170 : f32 to vector<2x32xf32>
    %371 = arith.addf %370, %369 : vector<2x32xf32>
    %372 = arith.divf %370, %371 : vector<2x32xf32>
    %373 = vector.extract_strided_slice %359 {offsets = [0, 64], sizes = [2, 32], strides = [1, 1]} : vector<2x128xf32> to vector<2x32xf32>
    %374 = math.tanh %373 : vector<2x32xf32>
    %375 = vector.extract_strided_slice %359 {offsets = [0, 96], sizes = [2, 32], strides = [1, 1]} : vector<2x128xf32> to vector<2x32xf32>
    %376 = arith.negf %375 : vector<2x32xf32>
    %377 = math.exp %376 : vector<2x32xf32>
    %cst_171 = arith.constant 1.000000e+00 : f32
    %378 = vector.broadcast %cst_171 : f32 to vector<2x32xf32>
    %379 = arith.addf %378, %377 : vector<2x32xf32>
    %380 = arith.divf %378, %379 : vector<2x32xf32>
    %381 = arith.mulf %372, %360 : vector<2x32xf32>
    %382 = arith.mulf %366, %374 : vector<2x32xf32>
    %383 = arith.addf %381, %382 : vector<2x32xf32>
    %384 = math.tanh %383 : vector<2x32xf32>
    %385 = arith.mulf %380, %384 : vector<2x32xf32>
    %c0_172 = arith.constant 0 : index
    %c16_173 = arith.constant 16 : index
    %386 = vector.load %arg5[%c0_172, %c16_173] : memref<2x88xf32, #tpu.memory_space<vmem>>, vector<2x32xf32>
    tpu.vector_store %arg5[%c0_172, %c16_173], %358 {strides = array<i32>} : memref<2x88xf32, #tpu.memory_space<vmem>>, vector<2x32xf32>,
    %c0_174 = arith.constant 0 : index
    %c48_175 = arith.constant 48 : index
    %387 = vector.load %arg5[%c0_174, %c48_175] : memref<2x88xf32, #tpu.memory_space<vmem>>, vector<2x32xf32>
    tpu.vector_store %arg5[%c0_174, %c48_175], %385 {strides = array<i32>} : memref<2x88xf32, #tpu.memory_space<vmem>>, vector<2x32xf32>,
    %c0_176 = arith.constant 0 : index
    %c0_177 = arith.constant 0 : index
    %388 = vector.load %arg6[%c0_176, %c0_177] : memref<2x32xf32, #tpu.memory_space<vmem>>, vector<2x32xf32>
    tpu.vector_store %arg6[%c0_176, %c0_177], %356 {strides = array<i32>} : memref<2x32xf32, #tpu.memory_space<vmem>>, vector<2x32xf32>,
    %c0_178 = arith.constant 0 : index
    %c0_179 = arith.constant 0 : index
    %389 = vector.load %arg7[%c0_178, %c0_179] : memref<2x32xf32, #tpu.memory_space<vmem>>, vector<2x32xf32>
    tpu.vector_store %arg7[%c0_178, %c0_179], %383 {strides = array<i32>} : memref<2x32xf32, #tpu.memory_space<vmem>>, vector<2x32xf32>,
    %390 = arith.index_cast %c4_i32 : i32 to index
    %c0_180 = arith.constant 0 : index
    %c0_181 = arith.constant 0 : index
    %391 = vector.load %arg2[%390, %c0_180, %c0_181] : memref<8x2x64xf32, #tpu.memory_space<vmem>>, vector<1x2x32xf32>
    %392 = vector.shape_cast %391 : vector<1x2x32xf32> to vector<2x32xf32>
    %393 = vector.shape_cast %358 : vector<2x32xf32> to vector<1x2x32xf32>
    tpu.vector_store %arg2[%390, %c0_180, %c0_181], %393 {strides = array<i32>} : memref<8x2x64xf32, #tpu.memory_space<vmem>>, vector<1x2x32xf32>,
    %394 = arith.index_cast %320 : i32 to index
    %c0_182 = arith.constant 0 : index
    %c32_183 = arith.constant 32 : index
    %395 = vector.load %arg2[%394, %c0_182, %c32_183] : memref<8x2x64xf32, #tpu.memory_space<vmem>>, vector<1x2x32xf32>
    %396 = vector.shape_cast %395 : vector<1x2x32xf32> to vector<2x32xf32>
    %397 = vector.shape_cast %385 : vector<2x32xf32> to vector<1x2x32xf32>
    tpu.vector_store %arg2[%394, %c0_182, %c32_183], %397 {strides = array<i32>} : memref<8x2x64xf32, #tpu.memory_space<vmem>>, vector<1x2x32xf32>,
    %c5_i32 = arith.constant 5 : i32
    %c7_i32_184 = arith.constant 7 : i32
    %398 = arith.subi %c7_i32_184, %c5_i32 : i32
    %399 = arith.index_cast %c5_i32 : i32 to index
    %c0_185 = arith.constant 0 : index
    %c0_186 = arith.constant 0 : index
    %400 = vector.load %arg0[%399, %c0_185, %c0_186] : memref<8x2x8xf32, #tpu.memory_space<vmem>>, vector<1x2x8xf32>
    %401 = vector.shape_cast %400 : vector<1x2x8xf32> to vector<2x8xf32>
    %c0_187 = arith.constant 0 : index
    %c0_188 = arith.constant 0 : index
    %402 = vector.load %arg5[%c0_187, %c0_188] : memref<2x88xf32, #tpu.memory_space<vmem>>, vector<2x8xf32>
    tpu.vector_store %arg5[%c0_187, %c0_188], %401 {strides = array<i32>} : memref<2x88xf32, #tpu.memory_space<vmem>>, vector<2x8xf32>,
    %403 = arith.index_cast %398 : i32 to index
    %c0_189 = arith.constant 0 : index
    %c0_190 = arith.constant 0 : index
    %404 = vector.load %arg0[%403, %c0_189, %c0_190] : memref<8x2x8xf32, #tpu.memory_space<vmem>>, vector<1x2x8xf32>
    %405 = vector.shape_cast %404 : vector<1x2x8xf32> to vector<2x8xf32>
    %c0_191 = arith.constant 0 : index
    %c8_192 = arith.constant 8 : index
    %406 = vector.load %arg5[%c0_191, %c8_192] : memref<2x88xf32, #tpu.memory_space<vmem>>, vector<2x8xf32>
    tpu.vector_store %arg5[%c0_191, %c8_192], %405 {strides = array<i32>} : memref<2x88xf32, #tpu.memory_space<vmem>>, vector<2x8xf32>,
    %c0_193 = arith.constant 0 : index
    %c0_194 = arith.constant 0 : index
    %407 = vector.load %arg5[%c0_193, %c0_194] : memref<2x88xf32, #tpu.memory_space<vmem>>, vector<2x88xf32>
    %c0_195 = arith.constant 0 : index
    %c0_196 = arith.constant 0 : index
    %408 = vector.load %arg1[%c0_195, %c0_196] : memref<88x256xf32, #tpu.memory_space<vmem>>, vector<88x256xf32>
    %cst_197 = arith.constant dense<0.000000e+00> : vector<2x256xf32>
    %409 = tpu.matmul %407, %408, %cst_197 {dimension_numbers = #tpu.dot_dimension_numbers<[1], [0], [0], [1], [0, 0, 1, 1], [], []>} : vector<2x88xf32>, vector<88x256xf32>, vector<2x256xf32> -> vector<2x256xf32>
    %410 = vector.extract_strided_slice %409 {offsets = [0, 0], sizes = [2, 128], strides = [1, 1]} : vector<2x256xf32> to vector<2x128xf32>
    %c0_198 = arith.constant 0 : index
    %c0_199 = arith.constant 0 : index
    %411 = vector.load %arg6[%c0_198, %c0_199] : memref<2x32xf32, #tpu.memory_space<vmem>>, vector<2x32xf32>
    %412 = vector.extract_strided_slice %410 {offsets = [0, 0], sizes = [2, 32], strides = [1, 1]} : vector<2x128xf32> to vector<2x32xf32>
    %413 = arith.negf %412 : vector<2x32xf32>
    %414 = math.exp %413 : vector<2x32xf32>
    %cst_200 = arith.constant 1.000000e+00 : f32
    %415 = vector.broadcast %cst_200 : f32 to vector<2x32xf32>
    %416 = arith.addf %415, %414 : vector<2x32xf32>
    %417 = arith.divf %415, %416 : vector<2x32xf32>
    %418 = vector.extract_strided_slice %410 {offsets = [0, 32], sizes = [2, 32], strides = [1, 1]} : vector<2x128xf32> to vector<2x32xf32>
    %419 = arith.negf %418 : vector<2x32xf32>
    %420 = math.exp %419 : vector<2x32xf32>
    %cst_201 = arith.constant 1.000000e+00 : f32
    %421 = vector.broadcast %cst_201 : f32 to vector<2x32xf32>
    %422 = arith.addf %421, %420 : vector<2x32xf32>
    %423 = arith.divf %421, %422 : vector<2x32xf32>
    %424 = vector.extract_strided_slice %410 {offsets = [0, 64], sizes = [2, 32], strides = [1, 1]} : vector<2x128xf32> to vector<2x32xf32>
    %425 = math.tanh %424 : vector<2x32xf32>
    %426 = vector.extract_strided_slice %410 {offsets = [0, 96], sizes = [2, 32], strides = [1, 1]} : vector<2x128xf32> to vector<2x32xf32>
    %427 = arith.negf %426 : vector<2x32xf32>
    %428 = math.exp %427 : vector<2x32xf32>
    %cst_202 = arith.constant 1.000000e+00 : f32
    %429 = vector.broadcast %cst_202 : f32 to vector<2x32xf32>
    %430 = arith.addf %429, %428 : vector<2x32xf32>
    %431 = arith.divf %429, %430 : vector<2x32xf32>
    %432 = arith.mulf %423, %411 : vector<2x32xf32>
    %433 = arith.mulf %417, %425 : vector<2x32xf32>
    %434 = arith.addf %432, %433 : vector<2x32xf32>
    %435 = math.tanh %434 : vector<2x32xf32>
    %436 = arith.mulf %431, %435 : vector<2x32xf32>
    %437 = vector.extract_strided_slice %409 {offsets = [0, 128], sizes = [2, 128], strides = [1, 1]} : vector<2x256xf32> to vector<2x128xf32>
    %c0_203 = arith.constant 0 : index
    %c0_204 = arith.constant 0 : index
    %438 = vector.load %arg7[%c0_203, %c0_204] : memref<2x32xf32, #tpu.memory_space<vmem>>, vector<2x32xf32>
    %439 = vector.extract_strided_slice %437 {offsets = [0, 0], sizes = [2, 32], strides = [1, 1]} : vector<2x128xf32> to vector<2x32xf32>
    %440 = arith.negf %439 : vector<2x32xf32>
    %441 = math.exp %440 : vector<2x32xf32>
    %cst_205 = arith.constant 1.000000e+00 : f32
    %442 = vector.broadcast %cst_205 : f32 to vector<2x32xf32>
    %443 = arith.addf %442, %441 : vector<2x32xf32>
    %444 = arith.divf %442, %443 : vector<2x32xf32>
    %445 = vector.extract_strided_slice %437 {offsets = [0, 32], sizes = [2, 32], strides = [1, 1]} : vector<2x128xf32> to vector<2x32xf32>
    %446 = arith.negf %445 : vector<2x32xf32>
    %447 = math.exp %446 : vector<2x32xf32>
    %cst_206 = arith.constant 1.000000e+00 : f32
    %448 = vector.broadcast %cst_206 : f32 to vector<2x32xf32>
    %449 = arith.addf %448, %447 : vector<2x32xf32>
    %450 = arith.divf %448, %449 : vector<2x32xf32>
    %451 = vector.extract_strided_slice %437 {offsets = [0, 64], sizes = [2, 32], strides = [1, 1]} : vector<2x128xf32> to vector<2x32xf32>
    %452 = math.tanh %451 : vector<2x32xf32>
    %453 = vector.extract_strided_slice %437 {offsets = [0, 96], sizes = [2, 32], strides = [1, 1]} : vector<2x128xf32> to vector<2x32xf32>
    %454 = arith.negf %453 : vector<2x32xf32>
    %455 = math.exp %454 : vector<2x32xf32>
    %cst_207 = arith.constant 1.000000e+00 : f32
    %456 = vector.broadcast %cst_207 : f32 to vector<2x32xf32>
    %457 = arith.addf %456, %455 : vector<2x32xf32>
    %458 = arith.divf %456, %457 : vector<2x32xf32>
    %459 = arith.mulf %450, %438 : vector<2x32xf32>
    %460 = arith.mulf %444, %452 : vector<2x32xf32>
    %461 = arith.addf %459, %460 : vector<2x32xf32>
    %462 = math.tanh %461 : vector<2x32xf32>
    %463 = arith.mulf %458, %462 : vector<2x32xf32>
    %c0_208 = arith.constant 0 : index
    %c16_209 = arith.constant 16 : index
    %464 = vector.load %arg5[%c0_208, %c16_209] : memref<2x88xf32, #tpu.memory_space<vmem>>, vector<2x32xf32>
    tpu.vector_store %arg5[%c0_208, %c16_209], %436 {strides = array<i32>} : memref<2x88xf32, #tpu.memory_space<vmem>>, vector<2x32xf32>,
    %c0_210 = arith.constant 0 : index
    %c48_211 = arith.constant 48 : index
    %465 = vector.load %arg5[%c0_210, %c48_211] : memref<2x88xf32, #tpu.memory_space<vmem>>, vector<2x32xf32>
    tpu.vector_store %arg5[%c0_210, %c48_211], %463 {strides = array<i32>} : memref<2x88xf32, #tpu.memory_space<vmem>>, vector<2x32xf32>,
    %c0_212 = arith.constant 0 : index
    %c0_213 = arith.constant 0 : index
    %466 = vector.load %arg6[%c0_212, %c0_213] : memref<2x32xf32, #tpu.memory_space<vmem>>, vector<2x32xf32>
    tpu.vector_store %arg6[%c0_212, %c0_213], %434 {strides = array<i32>} : memref<2x32xf32, #tpu.memory_space<vmem>>, vector<2x32xf32>,
    %c0_214 = arith.constant 0 : index
    %c0_215 = arith.constant 0 : index
    %467 = vector.load %arg7[%c0_214, %c0_215] : memref<2x32xf32, #tpu.memory_space<vmem>>, vector<2x32xf32>
    tpu.vector_store %arg7[%c0_214, %c0_215], %461 {strides = array<i32>} : memref<2x32xf32, #tpu.memory_space<vmem>>, vector<2x32xf32>,
    %468 = arith.index_cast %c5_i32 : i32 to index
    %c0_216 = arith.constant 0 : index
    %c0_217 = arith.constant 0 : index
    %469 = vector.load %arg2[%468, %c0_216, %c0_217] : memref<8x2x64xf32, #tpu.memory_space<vmem>>, vector<1x2x32xf32>
    %470 = vector.shape_cast %469 : vector<1x2x32xf32> to vector<2x32xf32>
    %471 = vector.shape_cast %436 : vector<2x32xf32> to vector<1x2x32xf32>
    tpu.vector_store %arg2[%468, %c0_216, %c0_217], %471 {strides = array<i32>} : memref<8x2x64xf32, #tpu.memory_space<vmem>>, vector<1x2x32xf32>,
    %472 = arith.index_cast %398 : i32 to index
    %c0_218 = arith.constant 0 : index
    %c32_219 = arith.constant 32 : index
    %473 = vector.load %arg2[%472, %c0_218, %c32_219] : memref<8x2x64xf32, #tpu.memory_space<vmem>>, vector<1x2x32xf32>
    %474 = vector.shape_cast %473 : vector<1x2x32xf32> to vector<2x32xf32>
    %475 = vector.shape_cast %463 : vector<2x32xf32> to vector<1x2x32xf32>
    tpu.vector_store %arg2[%472, %c0_218, %c32_219], %475 {strides = array<i32>} : memref<8x2x64xf32, #tpu.memory_space<vmem>>, vector<1x2x32xf32>,
    %c6_i32 = arith.constant 6 : i32
    %c7_i32_220 = arith.constant 7 : i32
    %476 = arith.subi %c7_i32_220, %c6_i32 : i32
    %477 = arith.index_cast %c6_i32 : i32 to index
    %c0_221 = arith.constant 0 : index
    %c0_222 = arith.constant 0 : index
    %478 = vector.load %arg0[%477, %c0_221, %c0_222] : memref<8x2x8xf32, #tpu.memory_space<vmem>>, vector<1x2x8xf32>
    %479 = vector.shape_cast %478 : vector<1x2x8xf32> to vector<2x8xf32>
    %c0_223 = arith.constant 0 : index
    %c0_224 = arith.constant 0 : index
    %480 = vector.load %arg5[%c0_223, %c0_224] : memref<2x88xf32, #tpu.memory_space<vmem>>, vector<2x8xf32>
    tpu.vector_store %arg5[%c0_223, %c0_224], %479 {strides = array<i32>} : memref<2x88xf32, #tpu.memory_space<vmem>>, vector<2x8xf32>,
    %481 = arith.index_cast %476 : i32 to index
    %c0_225 = arith.constant 0 : index
    %c0_226 = arith.constant 0 : index
    %482 = vector.load %arg0[%481, %c0_225, %c0_226] : memref<8x2x8xf32, #tpu.memory_space<vmem>>, vector<1x2x8xf32>
    %483 = vector.shape_cast %482 : vector<1x2x8xf32> to vector<2x8xf32>
    %c0_227 = arith.constant 0 : index
    %c8_228 = arith.constant 8 : index
    %484 = vector.load %arg5[%c0_227, %c8_228] : memref<2x88xf32, #tpu.memory_space<vmem>>, vector<2x8xf32>
    tpu.vector_store %arg5[%c0_227, %c8_228], %483 {strides = array<i32>} : memref<2x88xf32, #tpu.memory_space<vmem>>, vector<2x8xf32>,
    %c0_229 = arith.constant 0 : index
    %c0_230 = arith.constant 0 : index
    %485 = vector.load %arg5[%c0_229, %c0_230] : memref<2x88xf32, #tpu.memory_space<vmem>>, vector<2x88xf32>
    %c0_231 = arith.constant 0 : index
    %c0_232 = arith.constant 0 : index
    %486 = vector.load %arg1[%c0_231, %c0_232] : memref<88x256xf32, #tpu.memory_space<vmem>>, vector<88x256xf32>
    %cst_233 = arith.constant dense<0.000000e+00> : vector<2x256xf32>
    %487 = tpu.matmul %485, %486, %cst_233 {dimension_numbers = #tpu.dot_dimension_numbers<[1], [0], [0], [1], [0, 0, 1, 1], [], []>} : vector<2x88xf32>, vector<88x256xf32>, vector<2x256xf32> -> vector<2x256xf32>
    %488 = vector.extract_strided_slice %487 {offsets = [0, 0], sizes = [2, 128], strides = [1, 1]} : vector<2x256xf32> to vector<2x128xf32>
    %c0_234 = arith.constant 0 : index
    %c0_235 = arith.constant 0 : index
    %489 = vector.load %arg6[%c0_234, %c0_235] : memref<2x32xf32, #tpu.memory_space<vmem>>, vector<2x32xf32>
    %490 = vector.extract_strided_slice %488 {offsets = [0, 0], sizes = [2, 32], strides = [1, 1]} : vector<2x128xf32> to vector<2x32xf32>
    %491 = arith.negf %490 : vector<2x32xf32>
    %492 = math.exp %491 : vector<2x32xf32>
    %cst_236 = arith.constant 1.000000e+00 : f32
    %493 = vector.broadcast %cst_236 : f32 to vector<2x32xf32>
    %494 = arith.addf %493, %492 : vector<2x32xf32>
    %495 = arith.divf %493, %494 : vector<2x32xf32>
    %496 = vector.extract_strided_slice %488 {offsets = [0, 32], sizes = [2, 32], strides = [1, 1]} : vector<2x128xf32> to vector<2x32xf32>
    %497 = arith.negf %496 : vector<2x32xf32>
    %498 = math.exp %497 : vector<2x32xf32>
    %cst_237 = arith.constant 1.000000e+00 : f32
    %499 = vector.broadcast %cst_237 : f32 to vector<2x32xf32>
    %500 = arith.addf %499, %498 : vector<2x32xf32>
    %501 = arith.divf %499, %500 : vector<2x32xf32>
    %502 = vector.extract_strided_slice %488 {offsets = [0, 64], sizes = [2, 32], strides = [1, 1]} : vector<2x128xf32> to vector<2x32xf32>
    %503 = math.tanh %502 : vector<2x32xf32>
    %504 = vector.extract_strided_slice %488 {offsets = [0, 96], sizes = [2, 32], strides = [1, 1]} : vector<2x128xf32> to vector<2x32xf32>
    %505 = arith.negf %504 : vector<2x32xf32>
    %506 = math.exp %505 : vector<2x32xf32>
    %cst_238 = arith.constant 1.000000e+00 : f32
    %507 = vector.broadcast %cst_238 : f32 to vector<2x32xf32>
    %508 = arith.addf %507, %506 : vector<2x32xf32>
    %509 = arith.divf %507, %508 : vector<2x32xf32>
    %510 = arith.mulf %501, %489 : vector<2x32xf32>
    %511 = arith.mulf %495, %503 : vector<2x32xf32>
    %512 = arith.addf %510, %511 : vector<2x32xf32>
    %513 = math.tanh %512 : vector<2x32xf32>
    %514 = arith.mulf %509, %513 : vector<2x32xf32>
    %515 = vector.extract_strided_slice %487 {offsets = [0, 128], sizes = [2, 128], strides = [1, 1]} : vector<2x256xf32> to vector<2x128xf32>
    %c0_239 = arith.constant 0 : index
    %c0_240 = arith.constant 0 : index
    %516 = vector.load %arg7[%c0_239, %c0_240] : memref<2x32xf32, #tpu.memory_space<vmem>>, vector<2x32xf32>
    %517 = vector.extract_strided_slice %515 {offsets = [0, 0], sizes = [2, 32], strides = [1, 1]} : vector<2x128xf32> to vector<2x32xf32>
    %518 = arith.negf %517 : vector<2x32xf32>
    %519 = math.exp %518 : vector<2x32xf32>
    %cst_241 = arith.constant 1.000000e+00 : f32
    %520 = vector.broadcast %cst_241 : f32 to vector<2x32xf32>
    %521 = arith.addf %520, %519 : vector<2x32xf32>
    %522 = arith.divf %520, %521 : vector<2x32xf32>
    %523 = vector.extract_strided_slice %515 {offsets = [0, 32], sizes = [2, 32], strides = [1, 1]} : vector<2x128xf32> to vector<2x32xf32>
    %524 = arith.negf %523 : vector<2x32xf32>
    %525 = math.exp %524 : vector<2x32xf32>
    %cst_242 = arith.constant 1.000000e+00 : f32
    %526 = vector.broadcast %cst_242 : f32 to vector<2x32xf32>
    %527 = arith.addf %526, %525 : vector<2x32xf32>
    %528 = arith.divf %526, %527 : vector<2x32xf32>
    %529 = vector.extract_strided_slice %515 {offsets = [0, 64], sizes = [2, 32], strides = [1, 1]} : vector<2x128xf32> to vector<2x32xf32>
    %530 = math.tanh %529 : vector<2x32xf32>
    %531 = vector.extract_strided_slice %515 {offsets = [0, 96], sizes = [2, 32], strides = [1, 1]} : vector<2x128xf32> to vector<2x32xf32>
    %532 = arith.negf %531 : vector<2x32xf32>
    %533 = math.exp %532 : vector<2x32xf32>
    %cst_243 = arith.constant 1.000000e+00 : f32
    %534 = vector.broadcast %cst_243 : f32 to vector<2x32xf32>
    %535 = arith.addf %534, %533 : vector<2x32xf32>
    %536 = arith.divf %534, %535 : vector<2x32xf32>
    %537 = arith.mulf %528, %516 : vector<2x32xf32>
    %538 = arith.mulf %522, %530 : vector<2x32xf32>
    %539 = arith.addf %537, %538 : vector<2x32xf32>
    %540 = math.tanh %539 : vector<2x32xf32>
    %541 = arith.mulf %536, %540 : vector<2x32xf32>
    %c0_244 = arith.constant 0 : index
    %c16_245 = arith.constant 16 : index
    %542 = vector.load %arg5[%c0_244, %c16_245] : memref<2x88xf32, #tpu.memory_space<vmem>>, vector<2x32xf32>
    tpu.vector_store %arg5[%c0_244, %c16_245], %514 {strides = array<i32>} : memref<2x88xf32, #tpu.memory_space<vmem>>, vector<2x32xf32>,
    %c0_246 = arith.constant 0 : index
    %c48_247 = arith.constant 48 : index
    %543 = vector.load %arg5[%c0_246, %c48_247] : memref<2x88xf32, #tpu.memory_space<vmem>>, vector<2x32xf32>
    tpu.vector_store %arg5[%c0_246, %c48_247], %541 {strides = array<i32>} : memref<2x88xf32, #tpu.memory_space<vmem>>, vector<2x32xf32>,
    %c0_248 = arith.constant 0 : index
    %c0_249 = arith.constant 0 : index
    %544 = vector.load %arg6[%c0_248, %c0_249] : memref<2x32xf32, #tpu.memory_space<vmem>>, vector<2x32xf32>
    tpu.vector_store %arg6[%c0_248, %c0_249], %512 {strides = array<i32>} : memref<2x32xf32, #tpu.memory_space<vmem>>, vector<2x32xf32>,
    %c0_250 = arith.constant 0 : index
    %c0_251 = arith.constant 0 : index
    %545 = vector.load %arg7[%c0_250, %c0_251] : memref<2x32xf32, #tpu.memory_space<vmem>>, vector<2x32xf32>
    tpu.vector_store %arg7[%c0_250, %c0_251], %539 {strides = array<i32>} : memref<2x32xf32, #tpu.memory_space<vmem>>, vector<2x32xf32>,
    %546 = arith.index_cast %c6_i32 : i32 to index
    %c0_252 = arith.constant 0 : index
    %c0_253 = arith.constant 0 : index
    %547 = vector.load %arg2[%546, %c0_252, %c0_253] : memref<8x2x64xf32, #tpu.memory_space<vmem>>, vector<1x2x32xf32>
    %548 = vector.shape_cast %547 : vector<1x2x32xf32> to vector<2x32xf32>
    %549 = vector.shape_cast %514 : vector<2x32xf32> to vector<1x2x32xf32>
    tpu.vector_store %arg2[%546, %c0_252, %c0_253], %549 {strides = array<i32>} : memref<8x2x64xf32, #tpu.memory_space<vmem>>, vector<1x2x32xf32>,
    %550 = arith.index_cast %476 : i32 to index
    %c0_254 = arith.constant 0 : index
    %c32_255 = arith.constant 32 : index
    %551 = vector.load %arg2[%550, %c0_254, %c32_255] : memref<8x2x64xf32, #tpu.memory_space<vmem>>, vector<1x2x32xf32>
    %552 = vector.shape_cast %551 : vector<1x2x32xf32> to vector<2x32xf32>
    %553 = vector.shape_cast %541 : vector<2x32xf32> to vector<1x2x32xf32>
    tpu.vector_store %arg2[%550, %c0_254, %c32_255], %553 {strides = array<i32>} : memref<8x2x64xf32, #tpu.memory_space<vmem>>, vector<1x2x32xf32>,
    %c7_i32_256 = arith.constant 7 : i32
    %c7_i32_257 = arith.constant 7 : i32
    %554 = arith.subi %c7_i32_257, %c7_i32_256 : i32
    %555 = arith.index_cast %c7_i32_256 : i32 to index
    %c0_258 = arith.constant 0 : index
    %c0_259 = arith.constant 0 : index
    %556 = vector.load %arg0[%555, %c0_258, %c0_259] : memref<8x2x8xf32, #tpu.memory_space<vmem>>, vector<1x2x8xf32>
    %557 = vector.shape_cast %556 : vector<1x2x8xf32> to vector<2x8xf32>
    %c0_260 = arith.constant 0 : index
    %c0_261 = arith.constant 0 : index
    %558 = vector.load %arg5[%c0_260, %c0_261] : memref<2x88xf32, #tpu.memory_space<vmem>>, vector<2x8xf32>
    tpu.vector_store %arg5[%c0_260, %c0_261], %557 {strides = array<i32>} : memref<2x88xf32, #tpu.memory_space<vmem>>, vector<2x8xf32>,
    %559 = arith.index_cast %554 : i32 to index
    %c0_262 = arith.constant 0 : index
    %c0_263 = arith.constant 0 : index
    %560 = vector.load %arg0[%559, %c0_262, %c0_263] : memref<8x2x8xf32, #tpu.memory_space<vmem>>, vector<1x2x8xf32>
    %561 = vector.shape_cast %560 : vector<1x2x8xf32> to vector<2x8xf32>
    %c0_264 = arith.constant 0 : index
    %c8_265 = arith.constant 8 : index
    %562 = vector.load %arg5[%c0_264, %c8_265] : memref<2x88xf32, #tpu.memory_space<vmem>>, vector<2x8xf32>
    tpu.vector_store %arg5[%c0_264, %c8_265], %561 {strides = array<i32>} : memref<2x88xf32, #tpu.memory_space<vmem>>, vector<2x8xf32>,
    %c0_266 = arith.constant 0 : index
    %c0_267 = arith.constant 0 : index
    %563 = vector.load %arg5[%c0_266, %c0_267] : memref<2x88xf32, #tpu.memory_space<vmem>>, vector<2x88xf32>
    %c0_268 = arith.constant 0 : index
    %c0_269 = arith.constant 0 : index
    %564 = vector.load %arg1[%c0_268, %c0_269] : memref<88x256xf32, #tpu.memory_space<vmem>>, vector<88x256xf32>
    %cst_270 = arith.constant dense<0.000000e+00> : vector<2x256xf32>
    %565 = tpu.matmul %563, %564, %cst_270 {dimension_numbers = #tpu.dot_dimension_numbers<[1], [0], [0], [1], [0, 0, 1, 1], [], []>} : vector<2x88xf32>, vector<88x256xf32>, vector<2x256xf32> -> vector<2x256xf32>
    %566 = vector.extract_strided_slice %565 {offsets = [0, 0], sizes = [2, 128], strides = [1, 1]} : vector<2x256xf32> to vector<2x128xf32>
    %c0_271 = arith.constant 0 : index
    %c0_272 = arith.constant 0 : index
    %567 = vector.load %arg6[%c0_271, %c0_272] : memref<2x32xf32, #tpu.memory_space<vmem>>, vector<2x32xf32>
    %568 = vector.extract_strided_slice %566 {offsets = [0, 0], sizes = [2, 32], strides = [1, 1]} : vector<2x128xf32> to vector<2x32xf32>
    %569 = arith.negf %568 : vector<2x32xf32>
    %570 = math.exp %569 : vector<2x32xf32>
    %cst_273 = arith.constant 1.000000e+00 : f32
    %571 = vector.broadcast %cst_273 : f32 to vector<2x32xf32>
    %572 = arith.addf %571, %570 : vector<2x32xf32>
    %573 = arith.divf %571, %572 : vector<2x32xf32>
    %574 = vector.extract_strided_slice %566 {offsets = [0, 32], sizes = [2, 32], strides = [1, 1]} : vector<2x128xf32> to vector<2x32xf32>
    %575 = arith.negf %574 : vector<2x32xf32>
    %576 = math.exp %575 : vector<2x32xf32>
    %cst_274 = arith.constant 1.000000e+00 : f32
    %577 = vector.broadcast %cst_274 : f32 to vector<2x32xf32>
    %578 = arith.addf %577, %576 : vector<2x32xf32>
    %579 = arith.divf %577, %578 : vector<2x32xf32>
    %580 = vector.extract_strided_slice %566 {offsets = [0, 64], sizes = [2, 32], strides = [1, 1]} : vector<2x128xf32> to vector<2x32xf32>
    %581 = math.tanh %580 : vector<2x32xf32>
    %582 = vector.extract_strided_slice %566 {offsets = [0, 96], sizes = [2, 32], strides = [1, 1]} : vector<2x128xf32> to vector<2x32xf32>
    %583 = arith.negf %582 : vector<2x32xf32>
    %584 = math.exp %583 : vector<2x32xf32>
    %cst_275 = arith.constant 1.000000e+00 : f32
    %585 = vector.broadcast %cst_275 : f32 to vector<2x32xf32>
    %586 = arith.addf %585, %584 : vector<2x32xf32>
    %587 = arith.divf %585, %586 : vector<2x32xf32>
    %588 = arith.mulf %579, %567 : vector<2x32xf32>
    %589 = arith.mulf %573, %581 : vector<2x32xf32>
    %590 = arith.addf %588, %589 : vector<2x32xf32>
    %591 = math.tanh %590 : vector<2x32xf32>
    %592 = arith.mulf %587, %591 : vector<2x32xf32>
    %593 = vector.extract_strided_slice %565 {offsets = [0, 128], sizes = [2, 128], strides = [1, 1]} : vector<2x256xf32> to vector<2x128xf32>
    %c0_276 = arith.constant 0 : index
    %c0_277 = arith.constant 0 : index
    %594 = vector.load %arg7[%c0_276, %c0_277] : memref<2x32xf32, #tpu.memory_space<vmem>>, vector<2x32xf32>
    %595 = vector.extract_strided_slice %593 {offsets = [0, 0], sizes = [2, 32], strides = [1, 1]} : vector<2x128xf32> to vector<2x32xf32>
    %596 = arith.negf %595 : vector<2x32xf32>
    %597 = math.exp %596 : vector<2x32xf32>
    %cst_278 = arith.constant 1.000000e+00 : f32
    %598 = vector.broadcast %cst_278 : f32 to vector<2x32xf32>
    %599 = arith.addf %598, %597 : vector<2x32xf32>
    %600 = arith.divf %598, %599 : vector<2x32xf32>
    %601 = vector.extract_strided_slice %593 {offsets = [0, 32], sizes = [2, 32], strides = [1, 1]} : vector<2x128xf32> to vector<2x32xf32>
    %602 = arith.negf %601 : vector<2x32xf32>
    %603 = math.exp %602 : vector<2x32xf32>
    %cst_279 = arith.constant 1.000000e+00 : f32
    %604 = vector.broadcast %cst_279 : f32 to vector<2x32xf32>
    %605 = arith.addf %604, %603 : vector<2x32xf32>
    %606 = arith.divf %604, %605 : vector<2x32xf32>
    %607 = vector.extract_strided_slice %593 {offsets = [0, 64], sizes = [2, 32], strides = [1, 1]} : vector<2x128xf32> to vector<2x32xf32>
    %608 = math.tanh %607 : vector<2x32xf32>
    %609 = vector.extract_strided_slice %593 {offsets = [0, 96], sizes = [2, 32], strides = [1, 1]} : vector<2x128xf32> to vector<2x32xf32>
    %610 = arith.negf %609 : vector<2x32xf32>
    %611 = math.exp %610 : vector<2x32xf32>
    %cst_280 = arith.constant 1.000000e+00 : f32
    %612 = vector.broadcast %cst_280 : f32 to vector<2x32xf32>
    %613 = arith.addf %612, %611 : vector<2x32xf32>
    %614 = arith.divf %612, %613 : vector<2x32xf32>
    %615 = arith.mulf %606, %594 : vector<2x32xf32>
    %616 = arith.mulf %600, %608 : vector<2x32xf32>
    %617 = arith.addf %615, %616 : vector<2x32xf32>
    %618 = math.tanh %617 : vector<2x32xf32>
    %619 = arith.mulf %614, %618 : vector<2x32xf32>
    %c0_281 = arith.constant 0 : index
    %c16_282 = arith.constant 16 : index
    %620 = vector.load %arg5[%c0_281, %c16_282] : memref<2x88xf32, #tpu.memory_space<vmem>>, vector<2x32xf32>
    tpu.vector_store %arg5[%c0_281, %c16_282], %592 {strides = array<i32>} : memref<2x88xf32, #tpu.memory_space<vmem>>, vector<2x32xf32>,
    %c0_283 = arith.constant 0 : index
    %c48_284 = arith.constant 48 : index
    %621 = vector.load %arg5[%c0_283, %c48_284] : memref<2x88xf32, #tpu.memory_space<vmem>>, vector<2x32xf32>
    tpu.vector_store %arg5[%c0_283, %c48_284], %619 {strides = array<i32>} : memref<2x88xf32, #tpu.memory_space<vmem>>, vector<2x32xf32>,
    %c0_285 = arith.constant 0 : index
    %c0_286 = arith.constant 0 : index
    %622 = vector.load %arg6[%c0_285, %c0_286] : memref<2x32xf32, #tpu.memory_space<vmem>>, vector<2x32xf32>
    tpu.vector_store %arg6[%c0_285, %c0_286], %590 {strides = array<i32>} : memref<2x32xf32, #tpu.memory_space<vmem>>, vector<2x32xf32>,
    %c0_287 = arith.constant 0 : index
    %c0_288 = arith.constant 0 : index
    %623 = vector.load %arg7[%c0_287, %c0_288] : memref<2x32xf32, #tpu.memory_space<vmem>>, vector<2x32xf32>
    tpu.vector_store %arg7[%c0_287, %c0_288], %617 {strides = array<i32>} : memref<2x32xf32, #tpu.memory_space<vmem>>, vector<2x32xf32>,
    %624 = arith.index_cast %c7_i32_256 : i32 to index
    %c0_289 = arith.constant 0 : index
    %c0_290 = arith.constant 0 : index
    %625 = vector.load %arg2[%624, %c0_289, %c0_290] : memref<8x2x64xf32, #tpu.memory_space<vmem>>, vector<1x2x32xf32>
    %626 = vector.shape_cast %625 : vector<1x2x32xf32> to vector<2x32xf32>
    %627 = vector.shape_cast %592 : vector<2x32xf32> to vector<1x2x32xf32>
    tpu.vector_store %arg2[%624, %c0_289, %c0_290], %627 {strides = array<i32>} : memref<8x2x64xf32, #tpu.memory_space<vmem>>, vector<1x2x32xf32>,
    %628 = arith.index_cast %554 : i32 to index
    %c0_291 = arith.constant 0 : index
    %c32_292 = arith.constant 32 : index
    %629 = vector.load %arg2[%628, %c0_291, %c32_292] : memref<8x2x64xf32, #tpu.memory_space<vmem>>, vector<1x2x32xf32>
    %630 = vector.shape_cast %629 : vector<1x2x32xf32> to vector<2x32xf32>
    %631 = vector.shape_cast %619 : vector<2x32xf32> to vector<1x2x32xf32>
    tpu.vector_store %arg2[%628, %c0_291, %c32_292], %631 {strides = array<i32>} : memref<8x2x64xf32, #tpu.memory_space<vmem>>, vector<1x2x32xf32>,
    %c8_i32 = arith.constant 8 : i32
    %c0_293 = arith.constant 0 : index
    %c16_294 = arith.constant 16 : index
    %632 = vector.load %arg5[%c0_293, %c16_294] : memref<2x88xf32, #tpu.memory_space<vmem>>, vector<2x64xf32>
    %c0_295 = arith.constant 0 : index
    %c0_296 = arith.constant 0 : index
    %633 = vector.load %arg3[%c0_295, %c0_296] : memref<2x64xf32, #tpu.memory_space<vmem>>, vector<2x64xf32>
    tpu.vector_store %arg3[%c0_295, %c0_296], %632 {strides = array<i32>} : memref<2x64xf32, #tpu.memory_space<vmem>>, vector<2x64xf32>,
    %c0_297 = arith.constant 0 : index
    %c0_298 = arith.constant 0 : index
    %634 = vector.load %arg6[%c0_297, %c0_298] : memref<2x32xf32, #tpu.memory_space<vmem>>, vector<2x32xf32>
    %c0_299 = arith.constant 0 : index
    %c0_300 = arith.constant 0 : index
    %635 = vector.load %arg4[%c0_299, %c0_300] : memref<2x64xf32, #tpu.memory_space<vmem>>, vector<2x32xf32>
    tpu.vector_store %arg4[%c0_299, %c0_300], %634 {strides = array<i32>} : memref<2x64xf32, #tpu.memory_space<vmem>>, vector<2x32xf32>,
    %c0_301 = arith.constant 0 : index
    %c0_302 = arith.constant 0 : index
    %636 = vector.load %arg7[%c0_301, %c0_302] : memref<2x32xf32, #tpu.memory_space<vmem>>, vector<2x32xf32>
    %c0_303 = arith.constant 0 : index
    %c32_304 = arith.constant 32 : index
    %637 = vector.load %arg4[%c0_303, %c32_304] : memref<2x64xf32, #tpu.memory_space<vmem>>, vector<2x32xf32>
    tpu.vector_store %arg4[%c0_303, %c32_304], %636 {strides = array<i32>} : memref<2x64xf32, #tpu.memory_space<vmem>>, vector<2x32xf32>,
    return
  }
}

</mosaic_0001>

<bundles_post_ra>
// kernel: encoder_forward.1
= control target key start
LH: loop header
LB: loop body
LE: loop exit
PB: predicated region body
PF: predicated region fallthrough
CT: control target
= control target key end

     0   :  { %10 = vsyncpa [#allocation6], 0  ;;  %s1853_s21 = smov 8   ;;  %vm16_vm0 = vcmask 713728   ;;  %vm18_vm1 = vcmask 657024   ;;  %v1854_v6 = vmov 0.0   ;;  %s2634_s0 = inlined_call_operand.vmem [shape: f32[8,2,8], index: 0, kind: input, shape index: {}]   ;;  %s2635_s1 = inlined_call_operand.vmem [shape: f32[88,256], index: 1, kind: input, shape index: {}]   ;;  %s2636_s2 = inlined_call_operand.vmem [shape: f32[8,2,64], index: 2, kind: output, shape index: {0}]   ;;  %s2637_s3 = inlined_call_operand.hbm [shape: f32[2,64], index: 3, kind: output, shape index: {1}]   ;;  %s2638_s4 = inlined_call_operand.hbm [shape: f32[2,64], index: 4, kind: output, shape index: {2}]  }
   0x1   :  { %v1618_v0 = vld [vmem:[%s2634_s0 + $0xe] sm:$0x3]  ;;  %v1900_v2 = vld [vmem:[%s2635_s1 + $0xa0] sm:$0xff]  ;;  %v1907_v3 = vld [vmem:[%s2635_s1 + $0x98] sm:$0xff]  ;;  %17 = vst.msk [vmem:[#allocation2] sm:$0x3] %vm16_vm0, %v1854_v6  ;;  %125 = vmatprep.mubr.f32.mxu0 %v1854_v6 }
   0x2   :  { %v1895_v1 = vld [vmem:[%s2635_s1 + $0xa8] sm:$0xff]  ;;  %29 = vrot.lane.b32.xlu0 %v1618_v0, %s1853_s21  ;;  %v1912_v4 = vld [vmem:[%s2635_s1 + $0x90] sm:$0xff]  ;;  %v1926_v7 = vld [vmem:[%s2635_s1 + $0x80] sm:$0xff]  ;;  %v1855_v8 = vmov 1.0   ;;  %vm24_vm2 = vcmask 58368  }
   0x3   :  { %71 = vmatprep.subr.mxu0 %v1895_v1  ;;  %v1918_v5 = vld [vmem:[%s2635_s1 + $0x88] sm:$0xff]  ;;  %19 = vst.msk [vmem:[#allocation2] sm:$0x3] %vm18_vm1, %v1855_v8  ;;  %268 = vmatprep.subr.mxu1 %v1895_v1  ;;  %v1933_v9 = vld [vmem:[%s2635_s1 + $0x78] sm:$0xff]  ;;  %v1940_v10 = vld [vmem:[%s2635_s1 + $0x70] sm:$0xff] }
   0x4   :  { %72 = vmatpush1.msra.mxu0 %v1900_v2  ;;  %269 = vmatpush1.msra.mxu1 %v1900_v2  ;;  %v23_v11 = vld [vmem:[%s2634_s0] sm:$0x3]  ;;  %v1950_v12 = vld [vmem:[%s2635_s1 + $0x68] sm:$0xff]  ;;  %v1965_v14 = vld [vmem:[%s2635_s1 + $0x58] sm:$0xff] }
   0x5   :  { %73 = vmatprep.subr.mxu0 %v1907_v3  ;;  %270 = vmatprep.subr.mxu1 %v1907_v3  ;;  %25 = vst.msk [vmem:[#allocation2] sm:$0x3] %vm24_vm2, %v23_v11  ;;  %v1958_v13 = vld [vmem:[%s2635_s1 + $0x60] sm:$0xff] }
   0x6   :  { %74 = vmatpush1.msra.mxu0 %v1912_v4  ;;  %271 = vmatpush1.msra.mxu1 %v1912_v4 }
   0x7   :  { %75 = vmatprep.subr.mxu0 %v1918_v5  ;;  %272 = vmatprep.subr.mxu1 %v1918_v5 }
   0x8   :  { %76 = vmatpush1.msra.mxu0 %v1926_v7  ;;  %273 = vmatpush1.msra.mxu1 %v1926_v7 }
   0x9   :  { %77 = vmatprep.subr.mxu0 %v1933_v9 }
   0xa   :  { %78 = vmatpush1.msra.mxu0 %v1940_v10 }
   0xb   :  { %11 = vsyncpa [#allocation8], 0  ;;  %79 = vmatprep.subr.mxu0 %v1950_v12  ;;  %v1972_v15 = vld [vmem:[%s2635_s1 + $0x50] sm:$0xff]  ;;  %274 = vmatprep.subr.mxu1 %v1933_v9  ;;  %v1979_v16 = vld [vmem:[%s2635_s1 + $0x48] sm:$0xff]  ;;  %vm32_vm3 = vcmask 123968   ;;  %vm57_vm4 = vcmask 719872  }
   0xc   :  { %80 = vmatpush1.msra.mxu0 %v1958_v13  ;;  %275 = vmatpush1.msra.mxu1 %v1940_v10  ;;  %v1986_v17 = vld [vmem:[%s2635_s1 + $0x40] sm:$0xff]  ;;  %v1993_v18 = vld [vmem:[%s2635_s1 + $0x38] sm:$0xff]  ;;  %v2000_v19 = vld [vmem:[%s2635_s1 + $0x30] sm:$0xff]  ;;  %vm20_vm5 = vcmask 254976   ;;  %s1856_s13 = smov 64   ;;  %s1857_s14 = smov 32  }
   0xd   :  { %81 = vmatprep.subr.mxu0 %v1965_v14  ;;  %276 = vmatprep.subr.mxu1 %v1950_v12  ;;  %v2007_v20 = vld [vmem:[%s2635_s1 + $0x28] sm:$0xff]  ;;  %v2014_v21 = vld [vmem:[%s2635_s1 + $0x20] sm:$0xff]  ;;  %v2021_v22 = vld [vmem:[%s2635_s1 + $0x18] sm:$0xff]  ;;  %22 = vst.msk [vmem:[#allocation4] sm:$0x3] %vm20_vm5, %v1854_v6  ;;  %s1858_s15 = smov 48  }
   0xe   :  { %82 = vmatpush1.msra.mxu0 %v1972_v15  ;;  %277 = vmatpush1.msra.mxu1 %v1958_v13  ;;  %v2028_v23 = vld [vmem:[%s2635_s1 + $0x10] sm:$0xff]  ;;  %v2035_v24 = vld [vmem:[%s2635_s1 + $0x8] sm:$0xff]  ;;  %v2042_v25 = vld [vmem:[%s2635_s1] sm:$0xff]  ;;  %21 = vst.msk [vmem:[#allocation3] sm:$0x3] %vm20_vm5, %v1854_v6  ;;  %s1859_s18 = smov 80  }
   0xf   :  { %83 = vmatprep.subr.mxu0 %v1979_v16  ;;  %278 = vmatprep.subr.mxu1 %v1965_v14  ;;  %v1624_v60 = vld [vmem:[%s2634_s0 + $0xc] sm:$0x3]  ;;  %s1860_s19 = smov 96   ;;  %vm194_vm6 = vcmask 386176   ;;  %vm200_vm7 = vcmask 648576   ;;  %vm220_vm8 = vcmask 517376  }
  0x10   :  { %84 = vmatpush1.msra.mxu0 %v1986_v17  ;;  %279 = vmatpush1.msra.mxu1 %v1972_v15  ;;  %v1623_v62 = vld [vmem:[%s2634_s0 + $0x2] sm:$0x3]  ;;  %s1862_s26 = smov [#allocation5]   ;;  %s1863_s28 = smov [#allocation7]   ;;  %vm1576_vm9 = vcmask 517120  }
  0x11   :  { %85 = vmatprep.subr.mxu0 %v1993_v18  ;;  %280 = vmatprep.subr.mxu1 %v1979_v16  ;;  %s1594_s27 = sshll.u32 %s1862_s26, 4  ;;  %s1604_s29 = sshll.u32 %s1863_s28, 4  ;;  %s1595_s27 = int_to_ptr.vmem [resolvable:$true] %s1594_s27  ;;  %s1605_s29 = int_to_ptr.vmem [resolvable:$true] %s1604_s29 }
  0x12   :  { %86 = vmatpush1.msra.mxu0 %v2000_v19  ;;  %281 = vmatpush1.msra.mxu1 %v1986_v17  ;;  %p1814_p1 = scmp.lt.s32.totalorder %s1595_s27, %s1595_s27 }
  0x13   :  { %87 = vmatprep.subr.mxu0 %v2007_v20  ;;  %282 = vmatprep.subr.mxu1 %v1993_v18 }
  0x14   :  { %88 = vmatpush1.msra.mxu0 %v2014_v21  ;;  %283 = vmatpush1.msra.mxu1 %v2000_v19  ;;  %v161_v31 = vld [vmem:[#allocation4] sm:$0x3] }
  0x15   :  { %89 = vmatprep.subr.mxu0 %v2021_v22  ;;  %284 = vmatprep.subr.mxu1 %v2007_v20  ;;  %v132_v33 = vld [vmem:[#allocation3] sm:$0x3] }
  0x16   :  { %90 = vmatpush1.msra.mxu0 %v2028_v23  ;;  %285 = vmatpush1.msra.mxu1 %v2014_v21 }
  0x17   :  { %91 = vmatprep.subr.mxu0 %v2035_v24  ;;  %286 = vmatprep.subr.mxu1 %v2021_v22 }
  0x18   :  { %92 = vmatpush1.msra.mxu0 %v2042_v25  ;;  %287 = vmatpush1.msra.mxu1 %v2028_v23 }
  0x19   :  { %288 = vmatprep.subr.mxu1 %v2035_v24  ;;  %322 = vmatprep.mubr.f32.mxu1 %v1854_v6 }
  0x1a   :  { %289 = vmatpush1.msra.mxu1 %v2042_v25  ;;  %463 = vmatprep.subr.mxu0 %v1895_v1 }
  0x1b   :  { %658 = vmatprep.subr.mxu1 %v1895_v1 }
  0x74   :  { %v30_v26 = vpop.permute.xlu0 %29 }
  0x75   :  { %33 = vst.msk [vmem:[#allocation2] sm:$0x3] %vm32_vm3, %v30_v26 }
  0x7c   :  { %v34_v27 = vld [vmem:[#allocation2] sm:$0x3] }
  0x7d   :  { %1619 = vmatmul.mubr.msk.f32.vlgmr.msra.gmra.mxu0 %vm57_vm4, %v34_v27 }
  0x7e   :  { %464 = vmatpush1.msra.mxu0 %v1900_v2  ;;  %517 = vmatprep.mubr.f32.mxu0 %v1854_v6 }
  0x7f   :  { %465 = vmatprep.subr.mxu0 %v1907_v3 }
  0x80   :  { %466 = vmatpush1.msra.mxu0 %v1912_v4 }
  0x81   :  { %467 = vmatprep.subr.mxu0 %v1918_v5 }
  0x82   :  { %468 = vmatpush1.msra.mxu0 %v1926_v7 }
  0x83   :  { %469 = vmatprep.subr.mxu0 %v1933_v9 }
  0x84   :  { %470 = vmatpush1.msra.mxu0 %v1940_v10 }
  0x85   :  { %471 = vmatprep.subr.mxu0 %v1950_v12 }
  0x86   :  { %472 = vmatpush1.msra.mxu0 %v1958_v13 }
  0x87   :  { %473 = vmatprep.subr.mxu0 %v1965_v14 }
  0x88   :  { %474 = vmatpush1.msra.mxu0 %v1972_v15 }
  0x89   :  { %475 = vmatprep.subr.mxu0 %v1979_v16 }
  0x8a   :  { %476 = vmatpush1.msra.mxu0 %v1986_v17 }
  0x8b   :  { %477 = vmatprep.subr.mxu0 %v1993_v18 }
  0x8c   :  { %478 = vmatpush1.msra.mxu0 %v2000_v19 }
  0x8d   :  { %479 = vmatprep.subr.mxu0 %v2007_v20 }
  0x8e   :  { %480 = vmatpush1.msra.mxu0 %v2014_v21 }
  0x8f   :  { %481 = vmatprep.subr.mxu0 %v2021_v22 }
  0x90   :  { %482 = vmatpush1.msra.mxu0 %v2028_v23 }
  0x91   :  { %483 = vmatprep.subr.mxu0 %v2035_v24 }
  0x92   :  { %484 = vmatpush1.msra.mxu0 %v2042_v25 }
  0x93   :  { %851 = vmatprep.subr.mxu0 %v1895_v1 }
 0x13d   :  { %v127_v28 = vpop.f32.mrf.mxu0 }
 0x13e   :  { %1681 = vtanh.f32 %v127_v28  ;;  %v1620_v34 = vmul.f32 -1.442695, %v127_v28 }
 0x13f   :  { %v129_v29 = vpop.f32.mrf.mxu0 }
 0x140   :  { %1683 = vtanh.f32 %v129_v29  ;;  %v1621_v35 = vmul.f32 -1.442695, %v129_v29 }
 0x141   :  { %1685 = vpow2.f32 %v1620_v34 }
 0x142   :  { %1687 = vpow2.f32 %v1621_v35 }
 0x14b   :  { %v1682_v30 = vpop.eup %1681 }
 0x14c   :  { %146 = vrot.lane.b32.xlu0 %v1682_v30, %s1856_s13 }
 0x14d   :  { %v1684_v32 = vpop.eup %1683 }
 0x14e   :  { %175 = vrot.lane.b32.xlu1 %v1684_v32, %s1856_s13  ;;  %v1686_v36 = vpop.eup %1685 }
 0x14f   :  { %v1688_v37 = vpop.eup %1687  ;;  %v136_v38 = vadd.f32 1.0, %v1686_v36 }
 0x150   :  { %170 = vrot.lane.b32.xlu0 %v161_v31, %s1857_s14  ;;  %v165_v39 = vadd.f32 1.0, %v1688_v37 }
 0x151   :  { %1689 = vrcp.f32 %v136_v38 }
 0x152   :  { %141 = vrot.lane.b32.xlu1 %v132_v33, %s1857_s14  ;;  %1691 = vrcp.f32 %v165_v39 }
 0x15e   :  { %v1690_v40 = vpop.eup %1689 }
 0x15f   :  { %v1692_v43 = vpop.eup %1691 }
 0x1be   :  { %v147_v41 = vpop.permute.xlu0 %146 }
 0x1bf   :  { %v149_v42 = vmul.f32 %v1690_v40, %v147_v41 }
 0x1c0   :  { %v176_v44 = vpop.permute.xlu1 %175 }
 0x1c1   :  { %151 = vrot.lane.b32.xlu1 %v149_v42, %s1857_s14  ;;  %v178_v45 = vmul.f32 %v1692_v43, %v176_v44 }
 0x1c2   :  { %v171_v47 = vpop.permute.xlu0 %170 }
 0x1c3   :  { %180 = vrot.lane.b32.xlu0 %v178_v45, %s1857_s14  ;;  %v173_v51 = vmul.f32 %v1692_v43, %v171_v47 }
 0x1c4   :  { %v142_v46 = vpop.permute.xlu1 %141 }
 0x1c5   :  { %v144_v48 = vmul.f32 %v1690_v40, %v142_v46 }
 0x233   :  { %v152_v49 = vpop.permute.xlu1 %151 }
 0x234   :  { %v154_v50 = vadd.f32 %v152_v49, %v144_v48 }
 0x235   :  { %v181_v52 = vpop.permute.xlu0 %180 }
 0x236   :  { %1693 = vtanh.f32 %v154_v50  ;;  %v183_v53 = vadd.f32 %v181_v52, %v173_v51 }
 0x238   :  { %1695 = vtanh.f32 %v183_v53 }
 0x243   :  { %v1694_v54 = vpop.eup %1693 }
 0x244   :  { %157 = vrot.lane.b32.xlu1 %v1694_v54, %s1856_s13 }
 0x245   :  { %v1696_v55 = vpop.eup %1695 }
 0x246   :  { %186 = vrot.lane.b32.xlu0 %v1696_v55, %s1856_s13 }
 0x2b6   :  { %v158_v56 = vpop.permute.xlu1 %157 }
 0x2b7   :  { %v2093_v57 = vmul.f32 %v1690_v40, %v158_v56 }
 0x2b8   :  { %v187_v58 = vpop.permute.xlu0 %186 }
 0x2b9   :  { %191 = vrot.lane.b32.xlu1 %v2093_v57, %s1858_s15  ;;  %v2097_v59 = vmul.f32 %v1692_v43, %v187_v58 }
 0x2bb   :  { %197 = vrot.lane.b32.xlu0 %v2097_v59, %s1859_s18 }
 0x2bd   :  { %228 = vrot.lane.b32.xlu1 %v1624_v60, %s1853_s21  ;;  %v1631_v60 = vld [vmem:[%s2634_s0 + $0xa] sm:$0x3] }
 0x2bf   :  { %203 = vrot.lane.b32.xlu0 %v154_v50, %s1860_s19 }
 0x2c1   :  { %208 = vrot.lane.b32.xlu1 %v183_v53, %s1860_s19 }
 0x32b   :  { %v192_v61 = vpop.permute.xlu1 %191 }
 0x32c   :  { %195 = vst.msk [vmem:[#allocation2] sm:$0x3] %vm194_vm6, %v192_v61 }
 0x32d   :  { %v198_v63 = vpop.permute.xlu0 %197 }
 0x32e   :  { %201 = vst.msk [vmem:[#allocation2] sm:$0x3] %vm200_vm7, %v198_v63 }
 0x32f   :  { %v229_v0 = vpop.permute.xlu1 %228  ;;  %224 = vst.msk [vmem:[#allocation2] sm:$0x3] %vm24_vm2, %v1623_v62  ;;  %v1630_v62 = vld [vmem:[%s2634_s0 + $0x4] sm:$0x3] }
 0x330   :  { %231 = vst.msk [vmem:[#allocation2] sm:$0x3] %vm32_vm3, %v229_v0 }
 0x331   :  { %v204_v1 = vpop.permute.xlu0 %203 }
 0x332   :  { %206 = vst.msk [vmem:[#allocation3] sm:$0x3] %vm20_vm5, %v204_v1 }
 0x333   :  { %v209_v8 = vpop.permute.xlu1 %208 }
 0x334   :  { %211 = vst.msk [vmem:[#allocation4] sm:$0x3] %vm20_vm5, %v209_v8 }
 0x337   :  { %v232_v11 = vld [vmem:[#allocation2] sm:$0x3] }
 0x338   :  { %1625 = vmatmul.mubr.msk.f32.vlgmr.msra.gmra.mxu1 %vm57_vm4, %v232_v11 }
 0x339   :  { %659 = vmatpush1.msra.mxu1 %v1900_v2  ;;  %712 = vmatprep.mubr.f32.mxu1 %v1854_v6  ;;  %v329_v30 = vld [vmem:[#allocation3] sm:$0x3] }
 0x33a   :  { %660 = vmatprep.subr.mxu1 %v1907_v3 }
 0x33b   :  { %661 = vmatpush1.msra.mxu1 %v1912_v4  ;;  %v358_v31 = vld [vmem:[#allocation4] sm:$0x3] }
 0x33c   :  { %662 = vmatprep.subr.mxu1 %v1918_v5 }
 0x33d   :  { %663 = vmatpush1.msra.mxu1 %v1926_v7 }
 0x33e   :  { %664 = vmatprep.subr.mxu1 %v1933_v9 }
 0x33f   :  { %665 = vmatpush1.msra.mxu1 %v1940_v10 }
 0x340   :  { %666 = vmatprep.subr.mxu1 %v1950_v12 }
 0x341   :  { %667 = vmatpush1.msra.mxu1 %v1958_v13 }
 0x342   :  { %668 = vmatprep.subr.mxu1 %v1965_v14 }
 0x343   :  { %669 = vmatpush1.msra.mxu1 %v1972_v15 }
 0x344   :  { %670 = vmatprep.subr.mxu1 %v1979_v16 }
 0x345   :  { %671 = vmatpush1.msra.mxu1 %v1986_v17 }
 0x346   :  { %672 = vmatprep.subr.mxu1 %v1993_v18 }
 0x347   :  { %673 = vmatpush1.msra.mxu1 %v2000_v19 }
 0x348   :  { %674 = vmatprep.subr.mxu1 %v2007_v20 }
 0x349   :  { %675 = vmatpush1.msra.mxu1 %v2014_v21 }
 0x34a   :  { %676 = vmatprep.subr.mxu1 %v2021_v22 }
 0x34b   :  { %677 = vmatpush1.msra.mxu1 %v2028_v23 }
 0x34c   :  { %678 = vmatprep.subr.mxu1 %v2035_v24 }
 0x34d   :  { %679 = vmatpush1.msra.mxu1 %v2042_v25 }
 0x3f8   :  { %v324_v26 = vpop.f32.mrf.mxu1 }
 0x3f9   :  { %1697 = vtanh.f32 %v324_v26  ;;  %v1626_v32 = vmul.f32 -1.442695, %v324_v26 }
 0x3fa   :  { %v326_v27 = vpop.f32.mrf.mxu1 }
 0x3fb   :  { %1699 = vtanh.f32 %v326_v27  ;;  %v1627_v33 = vmul.f32 -1.442695, %v326_v27 }
 0x3fc   :  { %1701 = vpow2.f32 %v1626_v32 }
 0x3fd   :  { %1703 = vpow2.f32 %v1627_v33 }
 0x406   :  { %v1698_v28 = vpop.eup %1697 }
 0x407   :  { %343 = vrot.lane.b32.xlu0 %v1698_v28, %s1856_s13 }
 0x408   :  { %v1700_v29 = vpop.eup %1699 }
 0x409   :  { %372 = vrot.lane.b32.xlu1 %v1700_v29, %s1856_s13  ;;  %v1702_v34 = vpop.eup %1701 }
 0x40a   :  { %v1704_v35 = vpop.eup %1703  ;;  %v333_v36 = vadd.f32 1.0, %v1702_v34 }
 0x40b   :  { %338 = vrot.lane.b32.xlu0 %v329_v30, %s1857_s14  ;;  %v362_v37 = vadd.f32 1.0, %v1704_v35 }
 0x40c   :  { %1705 = vrcp.f32 %v333_v36 }
 0x40d   :  { %367 = vrot.lane.b32.xlu1 %v358_v31, %s1857_s14  ;;  %1707 = vrcp.f32 %v362_v37  ;;  %v1638_v37 = vld [vmem:[%s2634_s0 + $0x8] sm:$0x3] }
 0x419   :  { %v1706_v38 = vpop.eup %1705 }
 0x41a   :  { %v1708_v41 = vpop.eup %1707 }
 0x479   :  { %v344_v39 = vpop.permute.xlu0 %343 }
 0x47a   :  { %v346_v40 = vmul.f32 %v1706_v38, %v344_v39  ;;  %v1637_v39 = vld [vmem:[%s2634_s0 + $0x6] sm:$0x3] }
 0x47b   :  { %v373_v42 = vpop.permute.xlu1 %372 }
 0x47c   :  { %348 = vrot.lane.b32.xlu0 %v346_v40, %s1857_s14  ;;  %v375_v43 = vmul.f32 %v1708_v41, %v373_v42 }
 0x47d   :  { %v339_v44 = vpop.permute.xlu0 %338 }
 0x47e   :  { %377 = vrot.lane.b32.xlu1 %v375_v43, %s1857_s14  ;;  %v341_v45 = vmul.f32 %v1706_v38, %v339_v44 }
 0x47f   :  { %v368_v46 = vpop.permute.xlu1 %367 }
 0x480   :  { %v370_v49 = vmul.f32 %v1708_v41, %v368_v46 }
 0x4ee   :  { %v349_v47 = vpop.permute.xlu0 %348 }
 0x4ef   :  { %v351_v48 = vadd.f32 %v349_v47, %v341_v45 }
 0x4f0   :  { %v378_v50 = vpop.permute.xlu1 %377 }
 0x4f1   :  { %1709 = vtanh.f32 %v351_v48  ;;  %v380_v51 = vadd.f32 %v378_v50, %v370_v49 }
 0x4f3   :  { %1711 = vtanh.f32 %v380_v51 }
 0x4fe   :  { %v1710_v52 = vpop.eup %1709 }
 0x4ff   :  { %354 = vrot.lane.b32.xlu0 %v1710_v52, %s1856_s13 }
 0x500   :  { %v1712_v53 = vpop.eup %1711 }
 0x501   :  { %383 = vrot.lane.b32.xlu1 %v1712_v53, %s1856_s13 }
 0x571   :  { %v355_v54 = vpop.permute.xlu0 %354 }
 0x572   :  { %v2147_v55 = vmul.f32 %v1706_v38, %v355_v54 }
 0x573   :  { %v384_v56 = vpop.permute.xlu1 %383 }
 0x574   :  { %388 = vrot.lane.b32.xlu0 %v2147_v55, %s1858_s15  ;;  %v2151_v58 = vmul.f32 %v1708_v41, %v384_v56 }
 0x576   :  { %393 = vrot.lane.b32.xlu1 %v2151_v58, %s1859_s18 }
 0x578   :  { %423 = vrot.lane.b32.xlu0 %v1631_v60, %s1853_s21 }
 0x57a   :  { %398 = vrot.lane.b32.xlu1 %v351_v48, %s1860_s19 }
 0x57c   :  { %403 = vrot.lane.b32.xlu0 %v380_v51, %s1860_s19 }
 0x5e6   :  { %v389_v61 = vpop.permute.xlu0 %388 }
 0x5e7   :  { %391 = vst.msk [vmem:[#allocation2] sm:$0x3] %vm194_vm6, %v389_v61 }
 0x5e8   :  { %v394_v63 = vpop.permute.xlu1 %393 }
 0x5e9   :  { %396 = vst.msk [vmem:[#allocation2] sm:$0x3] %vm200_vm7, %v394_v63 }
 0x5ea   :  { %v424_v0 = vpop.permute.xlu0 %423  ;;  %419 = vst.msk [vmem:[#allocation2] sm:$0x3] %vm24_vm2, %v1630_v62 }
 0x5eb   :  { %426 = vst.msk [vmem:[#allocation2] sm:$0x3] %vm32_vm3, %v424_v0 }
 0x5ec   :  { %v399_v1 = vpop.permute.xlu1 %398 }
 0x5ed   :  { %401 = vst.msk [vmem:[#allocation3] sm:$0x3] %vm20_vm5, %v399_v1 }
 0x5ee   :  { %v404_v8 = vpop.permute.xlu0 %403 }
 0x5ef   :  { %406 = vst.msk [vmem:[#allocation4] sm:$0x3] %vm20_vm5, %v404_v8 }
 0x5f2   :  { %v427_v11 = vld [vmem:[#allocation2] sm:$0x3] }
 0x5f3   :  { %1632 = vmatmul.mubr.msk.f32.vlgmr.msra.gmra.mxu0 %vm57_vm4, %v427_v11 }
 0x5f4   :  { %852 = vmatpush1.msra.mxu0 %v1900_v2  ;;  %905 = vmatprep.mubr.f32.mxu0 %v1854_v6 }
 0x5f5   :  { %853 = vmatprep.subr.mxu0 %v1907_v3 }
 0x5f6   :  { %854 = vmatpush1.msra.mxu0 %v1912_v4 }
 0x5f7   :  { %855 = vmatprep.subr.mxu0 %v1918_v5 }
 0x5f8   :  { %856 = vmatpush1.msra.mxu0 %v1926_v7  ;;  %v524_v7 = vld [vmem:[#allocation3] sm:$0x3] }
 0x5f9   :  { %857 = vmatprep.subr.mxu0 %v1933_v9  ;;  %v553_v9 = vld [vmem:[#allocation4] sm:$0x3] }
 0x5fa   :  { %858 = vmatpush1.msra.mxu0 %v1940_v10 }
 0x5fb   :  { %859 = vmatprep.subr.mxu0 %v1950_v12 }
 0x5fc   :  { %860 = vmatpush1.msra.mxu0 %v1958_v13 }
 0x5fd   :  { %861 = vmatprep.subr.mxu0 %v1965_v14 }
 0x5fe   :  { %862 = vmatpush1.msra.mxu0 %v1972_v15 }
 0x5ff   :  { %863 = vmatprep.subr.mxu0 %v1979_v16 }
 0x600   :  { %864 = vmatpush1.msra.mxu0 %v1986_v17 }
 0x601   :  { %865 = vmatprep.subr.mxu0 %v1993_v18 }
 0x602   :  { %866 = vmatpush1.msra.mxu0 %v2000_v19 }
 0x603   :  { %867 = vmatprep.subr.mxu0 %v2007_v20 }
 0x604   :  { %868 = vmatpush1.msra.mxu0 %v2014_v21 }
 0x605   :  { %869 = vmatprep.subr.mxu0 %v2021_v22 }
 0x606   :  { %870 = vmatpush1.msra.mxu0 %v2028_v23 }
 0x607   :  { %871 = vmatprep.subr.mxu0 %v2035_v24 }
 0x608   :  { %872 = vmatpush1.msra.mxu0 %v2042_v25 }
 0x6b3   :  { %v519_v2 = vpop.f32.mrf.mxu0 }
 0x6b4   :  { %1713 = vtanh.f32 %v519_v2  ;;  %v1633_v10 = vmul.f32 -1.442695, %v519_v2 }
 0x6b5   :  { %v521_v3 = vpop.f32.mrf.mxu0 }
 0x6b6   :  { %1715 = vtanh.f32 %v521_v3  ;;  %v1634_v12 = vmul.f32 -1.442695, %v521_v3 }
 0x6b7   :  { %1717 = vpow2.f32 %v1633_v10 }
 0x6b8   :  { %1719 = vpow2.f32 %v1634_v12 }
 0x6c1   :  { %v1714_v4 = vpop.eup %1713 }
 0x6c2   :  { %538 = vrot.lane.b32.xlu1 %v1714_v4, %s1856_s13 }
 0x6c3   :  { %v1716_v5 = vpop.eup %1715 }
 0x6c4   :  { %567 = vrot.lane.b32.xlu0 %v1716_v5, %s1856_s13  ;;  %v1718_v13 = vpop.eup %1717 }
 0x6c5   :  { %v1720_v14 = vpop.eup %1719  ;;  %v528_v15 = vadd.f32 1.0, %v1718_v13 }
 0x6c6   :  { %533 = vrot.lane.b32.xlu1 %v524_v7, %s1857_s14  ;;  %v557_v16 = vadd.f32 1.0, %v1720_v14 }
 0x6c7   :  { %1721 = vrcp.f32 %v528_v15 }
 0x6c8   :  { %562 = vrot.lane.b32.xlu0 %v553_v9, %s1857_s14  ;;  %1723 = vrcp.f32 %v557_v16 }
 0x6d4   :  { %v1722_v17 = vpop.eup %1721 }
 0x6d5   :  { %v1724_v20 = vpop.eup %1723 }
 0x734   :  { %v539_v18 = vpop.permute.xlu1 %538 }
 0x735   :  { %v541_v19 = vmul.f32 %v1722_v17, %v539_v18  ;;  %v1645_v18 = vld [vmem:[%s2634_s0 + $0x6] sm:$0x3] }
 0x736   :  { %v568_v21 = vpop.permute.xlu0 %567 }
 0x737   :  { %543 = vrot.lane.b32.xlu1 %v541_v19, %s1857_s14  ;;  %v570_v22 = vmul.f32 %v1724_v20, %v568_v21 }
 0x738   :  { %v534_v23 = vpop.permute.xlu1 %533 }
 0x739   :  { %572 = vrot.lane.b32.xlu0 %v570_v22, %s1857_s14  ;;  %v536_v24 = vmul.f32 %v1722_v17, %v534_v23 }
 0x73a   :  { %v563_v25 = vpop.permute.xlu0 %562 }
 0x73b   :  { %v565_v28 = vmul.f32 %v1724_v20, %v563_v25 }
 0x7a9   :  { %v544_v26 = vpop.permute.xlu1 %543 }
 0x7aa   :  { %v546_v27 = vadd.f32 %v544_v26, %v536_v24 }
 0x7ab   :  { %v573_v29 = vpop.permute.xlu0 %572 }
 0x7ac   :  { %1725 = vtanh.f32 %v546_v27  ;;  %v575_v30 = vadd.f32 %v573_v29, %v565_v28 }
 0x7ae   :  { %1727 = vtanh.f32 %v575_v30 }
 0x7b9   :  { %v1726_v31 = vpop.eup %1725 }
 0x7ba   :  { %549 = vrot.lane.b32.xlu1 %v1726_v31, %s1856_s13 }
 0x7bb   :  { %v1728_v32 = vpop.eup %1727 }
 0x7bc   :  { %578 = vrot.lane.b32.xlu0 %v1728_v32, %s1856_s13 }
 0x82c   :  { %v550_v33 = vpop.permute.xlu1 %549 }
 0x82d   :  { %v2201_v34 = vmul.f32 %v1722_v17, %v550_v33 }
 0x82e   :  { %v579_v35 = vpop.permute.xlu0 %578 }
 0x82f   :  { %583 = vrot.lane.b32.xlu1 %v2201_v34, %s1858_s15  ;;  %v2205_v36 = vmul.f32 %v1724_v20, %v579_v35  ;;  %v1644_v20 = vld [vmem:[%s2634_s0 + $0x8] sm:$0x3] }
 0x831   :  { %588 = vrot.lane.b32.xlu0 %v2205_v36, %s1859_s18 }
 0x833   :  { %618 = vrot.lane.b32.xlu1 %v1638_v37, %s1853_s21 }
 0x835   :  { %593 = vrot.lane.b32.xlu0 %v546_v27, %s1860_s19 }
 0x837   :  { %598 = vrot.lane.b32.xlu1 %v575_v30, %s1860_s19 }
 0x8a1   :  { %v584_v38 = vpop.permute.xlu1 %583 }
 0x8a2   :  { %586 = vst.msk [vmem:[#allocation2] sm:$0x3] %vm194_vm6, %v584_v38 }
 0x8a3   :  { %v589_v40 = vpop.permute.xlu0 %588 }
 0x8a4   :  { %591 = vst.msk [vmem:[#allocation2] sm:$0x3] %vm200_vm7, %v589_v40 }
 0x8a5   :  { %v619_v41 = vpop.permute.xlu1 %618  ;;  %614 = vst.msk [vmem:[#allocation2] sm:$0x3] %vm24_vm2, %v1637_v39 }
 0x8a6   :  { %621 = vst.msk [vmem:[#allocation2] sm:$0x3] %vm32_vm3, %v619_v41 }
 0x8a7   :  { %v594_v42 = vpop.permute.xlu0 %593 }
 0x8a8   :  { %596 = vst.msk [vmem:[#allocation3] sm:$0x3] %vm20_vm5, %v594_v42 }
 0x8a9   :  { %v599_v43 = vpop.permute.xlu1 %598 }
 0x8aa   :  { %601 = vst.msk [vmem:[#allocation4] sm:$0x3] %vm20_vm5, %v599_v43 }
 0x8ad   :  { %v622_v44 = vld [vmem:[#allocation2] sm:$0x3] }
 0x8ae   :  { %1639 = vmatmul.mubr.msk.f32.vlgmr.msra.gmra.mxu1 %vm57_vm4, %v622_v44 }
 0x8af   :  { %1096 = vmatprep.mubr.f32.mxu1 %v1854_v6  ;;  %v719_v49 = vld [vmem:[#allocation3] sm:$0x3] }
 0x8b1   :  { %v748_v50 = vld [vmem:[#allocation4] sm:$0x3] }
 0x96e   :  { %v714_v45 = vpop.f32.mrf.mxu1 }
 0x96f   :  { %1729 = vtanh.f32 %v714_v45  ;;  %v1640_v51 = vmul.f32 -1.442695, %v714_v45 }
 0x970   :  { %v716_v46 = vpop.f32.mrf.mxu1 }
 0x971   :  { %1731 = vtanh.f32 %v716_v46  ;;  %v1641_v52 = vmul.f32 -1.442695, %v716_v46 }
 0x972   :  { %1733 = vpow2.f32 %v1640_v51 }
 0x973   :  { %1735 = vpow2.f32 %v1641_v52 }
 0x97c   :  { %v1730_v47 = vpop.eup %1729 }
 0x97d   :  { %733 = vrot.lane.b32.xlu0 %v1730_v47, %s1856_s13 }
 0x97e   :  { %v1732_v48 = vpop.eup %1731 }
 0x97f   :  { %762 = vrot.lane.b32.xlu1 %v1732_v48, %s1856_s13  ;;  %v1734_v53 = vpop.eup %1733 }
 0x980   :  { %v1736_v54 = vpop.eup %1735  ;;  %v723_v56 = vadd.f32 1.0, %v1734_v53 }
 0x981   :  { %728 = vrot.lane.b32.xlu0 %v719_v49, %s1857_s14  ;;  %v752_v60 = vadd.f32 1.0, %v1736_v54  ;;  %v2282_v54 = vld [vmem:[%s2635_s1 + $0xa8] sm:$0xff] }
 0x982   :  { %1737 = vrcp.f32 %v723_v56  ;;  %v2287_v56 = vld [vmem:[%s2635_s1 + $0xa0] sm:$0xff]  ;;  %1042 = vmatprep.subr.mxu1 %v2282_v54  ;;  %1233 = vmatprep.subr.mxu0 %v2282_v54 }
 0x983   :  { %757 = vrot.lane.b32.xlu1 %v748_v50, %s1857_s14  ;;  %1739 = vrcp.f32 %v752_v60  ;;  %v2292_v60 = vld [vmem:[%s2635_s1 + $0x98] sm:$0xff]  ;;  %1043 = vmatpush1.msra.mxu1 %v2287_v56 }
 0x984   :  { %1044 = vmatprep.subr.mxu1 %v2292_v60 }
 0x98f   :  { %v1738_v61 = vpop.eup %1737 }
 0x990   :  { %v1740_v0 = vpop.eup %1739 }
 0x9ef   :  { %v734_v62 = vpop.permute.xlu0 %733 }
 0x9f0   :  { %v736_v63 = vmul.f32 %v1738_v61, %v734_v62 }
 0x9f1   :  { %v763_v1 = vpop.permute.xlu1 %762 }
 0x9f2   :  { %738 = vrot.lane.b32.xlu0 %v736_v63, %s1857_s14  ;;  %v765_v8 = vmul.f32 %v1740_v0, %v763_v1  ;;  %v2305_v63 = vld [vmem:[%s2635_s1 + $0x88] sm:$0xff]  ;;  %v2319_v1 = vld [vmem:[%s2635_s1 + $0x78] sm:$0xff] }
 0x9f3   :  { %v729_v11 = vpop.permute.xlu0 %728 }
 0x9f4   :  { %767 = vrot.lane.b32.xlu1 %v765_v8, %s1857_s14  ;;  %v731_v2 = vmul.f32 %v1738_v61, %v729_v11  ;;  %v2326_v11 = vld [vmem:[%s2635_s1 + $0x70] sm:$0xff] }
 0x9f5   :  { %v758_v3 = vpop.permute.xlu1 %757 }
 0x9f6   :  { %v760_v7 = vmul.f32 %v1740_v0, %v758_v3  ;;  %v2340_v3 = vld [vmem:[%s2635_s1 + $0x60] sm:$0xff] }
 0xa64   :  { %v739_v4 = vpop.permute.xlu0 %738 }
 0xa65   :  { %v741_v5 = vadd.f32 %v739_v4, %v731_v2  ;;  %v2334_v2 = vld [vmem:[%s2635_s1 + $0x68] sm:$0xff]  ;;  %v2354_v4 = vld [vmem:[%s2635_s1 + $0x58] sm:$0xff] }
 0xa66   :  { %v768_v9 = vpop.permute.xlu1 %767 }
 0xa67   :  { %1741 = vtanh.f32 %v741_v5  ;;  %v770_v10 = vadd.f32 %v768_v9, %v760_v7  ;;  %v2367_v7 = vld [vmem:[%s2635_s1 + $0x48] sm:$0xff]  ;;  %v2374_v9 = vld [vmem:[%s2635_s1 + $0x40] sm:$0xff] }
 0xa69   :  { %1743 = vtanh.f32 %v770_v10 }
 0xa74   :  { %v1742_v12 = vpop.eup %1741 }
 0xa75   :  { %744 = vrot.lane.b32.xlu0 %v1742_v12, %s1856_s13  ;;  %v1013_v12 = vld [vmem:[%s2635_s1 + $0x30] sm:$0xff] }
 0xa76   :  { %v1744_v13 = vpop.eup %1743 }
 0xa77   :  { %773 = vrot.lane.b32.xlu1 %v1744_v13, %s1856_s13  ;;  %v1012_v13 = vld [vmem:[%s2635_s1 + $0x28] sm:$0xff] }
 0xae7   :  { %v745_v14 = vpop.permute.xlu0 %744 }
 0xae8   :  { %v2234_v15 = vmul.f32 %v1738_v61, %v745_v14  ;;  %v2298_v61 = vld [vmem:[%s2635_s1 + $0x90] sm:$0xff]  ;;  %v1011_v14 = vld [vmem:[%s2635_s1 + $0x20] sm:$0xff] }
 0xae9   :  { %v774_v16 = vpop.permute.xlu1 %773  ;;  %1045 = vmatpush1.msra.mxu1 %v2298_v61 }
 0xaea   :  { %778 = vrot.lane.b32.xlu0 %v2234_v15, %s1858_s15  ;;  %v2238_v17 = vmul.f32 %v1740_v0, %v774_v16  ;;  %v2313_v0 = vld [vmem:[%s2635_s1 + $0x80] sm:$0xff]  ;;  %1046 = vmatprep.subr.mxu1 %v2305_v63  ;;  %v1010_v16 = vld [vmem:[%s2635_s1 + $0x18] sm:$0xff] }
 0xaeb   :  { %1047 = vmatpush1.msra.mxu1 %v2313_v0 }
 0xaec   :  { %783 = vrot.lane.b32.xlu1 %v2238_v17, %s1859_s18  ;;  %1048 = vmatprep.subr.mxu1 %v2319_v1 }
 0xaed   :  { %1049 = vmatpush1.msra.mxu1 %v2326_v11 }
 0xaee   :  { %811 = vrot.lane.b32.xlu0 %v1645_v18, %s1853_s21  ;;  %1050 = vmatprep.subr.mxu1 %v2334_v2  ;;  %v1009_v18 = vld [vmem:[%s2635_s1 + $0x10] sm:$0xff] }
 0xaef   :  { %1051 = vmatpush1.msra.mxu1 %v2340_v3 }
 0xaf0   :  { %788 = vrot.lane.b32.xlu1 %v741_v5, %s1860_s19  ;;  %v2359_v5 = vld [vmem:[%s2635_s1 + $0x50] sm:$0xff]  ;;  %1052 = vmatprep.subr.mxu1 %v2354_v4 }
 0xaf1   :  { %1053 = vmatpush1.msra.mxu1 %v2359_v5 }
 0xaf2   :  { %793 = vrot.lane.b32.xlu0 %v770_v10, %s1860_s19  ;;  %1054 = vmatprep.subr.mxu1 %v2367_v7  ;;  %v2381_v10 = vld [vmem:[%s2635_s1 + $0x38] sm:$0xff] }
 0xaf3   :  { %1055 = vmatpush1.msra.mxu1 %v2374_v9 }
 0xaf4   :  { %1056 = vmatprep.subr.mxu1 %v2381_v10 }
 0xaf5   :  { %1057 = vmatpush1.msra.mxu1 %v1013_v12 }
 0xaf6   :  { %1058 = vmatprep.subr.mxu1 %v1012_v13 }
 0xaf7   :  { %1059 = vmatpush1.msra.mxu1 %v1011_v14 }
 0xaf8   :  { %1060 = vmatprep.subr.mxu1 %v1010_v16 }
 0xaf9   :  { %1061 = vmatpush1.msra.mxu1 %v1009_v18 }
 0xb5c   :  { %v779_v19 = vpop.permute.xlu0 %778 }
 0xb5d   :  { %781 = vst.msk [vmem:[#allocation2] sm:$0x3] %vm194_vm6, %v779_v19  ;;  %v1008_v19 = vld [vmem:[%s2635_s1 + $0x8] sm:$0xff] }
 0xb5e   :  { %v784_v21 = vpop.permute.xlu1 %783  ;;  %1062 = vmatprep.subr.mxu1 %v1008_v19 }
 0xb5f   :  { %786 = vst.msk [vmem:[#allocation2] sm:$0x3] %vm200_vm7, %v784_v21 }
 0xb60   :  { %v812_v22 = vpop.permute.xlu0 %811  ;;  %808 = vst.msk [vmem:[#allocation2] sm:$0x3] %vm24_vm2, %v1644_v20  ;;  %v1007_v20 = vld [vmem:[%s2635_s1] sm:$0xff] }
 0xb61   :  { %814 = vst.msk [vmem:[#allocation2] sm:$0x3] %vm32_vm3, %v812_v22  ;;  %1063 = vmatpush1.msra.mxu1 %v1007_v20 }
 0xb62   :  { %v789_v23 = vpop.permute.xlu1 %788  ;;  %1424 = vmatprep.subr.mxu1 %v2282_v54 }
 0xb63   :  { %791 = vst.msk [vmem:[#allocation3] sm:$0x3] %vm20_vm5, %v789_v23 }
 0xb64   :  { %v794_v24 = vpop.permute.xlu0 %793 }
 0xb65   :  { %796 = vst.msk [vmem:[#allocation4] sm:$0x3] %vm20_vm5, %v794_v24 }
 0xb68   :  { %v815_v25 = vld [vmem:[#allocation2] sm:$0x3] }
 0xb69   :  { %1646 = vmatmul.mubr.msk.f32.vlgmr.msra.gmra.mxu0 %vm57_vm4, %v815_v25  ;;  %v1652_v25 = vld [vmem:[%s2634_s0 + $0x4] sm:$0x3] }
 0xb6a   :  { %1287 = vmatprep.mubr.f32.mxu0 %v1854_v6  ;;  %v912_v30 = vld [vmem:[#allocation3] sm:$0x3]  ;;  %1234 = vmatpush1.msra.mxu0 %v2287_v56 }
 0xb6b   :  { %1235 = vmatprep.subr.mxu0 %v2292_v60 }
 0xb6c   :  { %v941_v31 = vld [vmem:[#allocation4] sm:$0x3]  ;;  %1236 = vmatpush1.msra.mxu0 %v2298_v61 }
 0xb6d   :  { %1237 = vmatprep.subr.mxu0 %v2305_v63 }
 0xb6e   :  { %1238 = vmatpush1.msra.mxu0 %v2313_v0 }
 0xb6f   :  { %1239 = vmatprep.subr.mxu0 %v2319_v1 }
 0xb70   :  { %1240 = vmatpush1.msra.mxu0 %v2326_v11 }
 0xb71   :  { %1241 = vmatprep.subr.mxu0 %v2334_v2 }
 0xb72   :  { %1242 = vmatpush1.msra.mxu0 %v2340_v3 }
 0xb73   :  { %1243 = vmatprep.subr.mxu0 %v2354_v4 }
 0xb74   :  { %1244 = vmatpush1.msra.mxu0 %v2359_v5 }
 0xb75   :  { %1245 = vmatprep.subr.mxu0 %v2367_v7 }
 0xb76   :  { %1246 = vmatpush1.msra.mxu0 %v2374_v9 }
 0xb77   :  { %1247 = vmatprep.subr.mxu0 %v2381_v10 }
 0xb78   :  { %1248 = vmatpush1.msra.mxu0 %v1013_v12 }
 0xb79   :  { %1249 = vmatprep.subr.mxu0 %v1012_v13 }
 0xb7a   :  { %1250 = vmatpush1.msra.mxu0 %v1011_v14 }
 0xb7b   :  { %1251 = vmatprep.subr.mxu0 %v1010_v16 }
 0xb7c   :  { %1252 = vmatpush1.msra.mxu0 %v1009_v18 }
 0xb7d   :  { %1253 = vmatprep.subr.mxu0 %v1008_v19 }
 0xb7e   :  { %1254 = vmatpush1.msra.mxu0 %v1007_v20 }
 0xc29   :  { %v907_v26 = vpop.f32.mrf.mxu0 }
 0xc2a   :  { %1745 = vtanh.f32 %v907_v26  ;;  %v1647_v32 = vmul.f32 -1.442695, %v907_v26 }
 0xc2b   :  { %v909_v27 = vpop.f32.mrf.mxu0 }
 0xc2c   :  { %1747 = vtanh.f32 %v909_v27  ;;  %v1648_v33 = vmul.f32 -1.442695, %v909_v27  ;;  %v1651_v27 = vld [vmem:[%s2634_s0 + $0xa] sm:$0x3] }
 0xc2d   :  { %1749 = vpow2.f32 %v1647_v32 }
 0xc2e   :  { %1751 = vpow2.f32 %v1648_v33 }
 0xc37   :  { %v1746_v28 = vpop.eup %1745 }
 0xc38   :  { %926 = vrot.lane.b32.xlu1 %v1746_v28, %s1856_s13 }
 0xc39   :  { %v1748_v29 = vpop.eup %1747 }
 0xc3a   :  { %955 = vrot.lane.b32.xlu0 %v1748_v29, %s1856_s13  ;;  %v1750_v35 = vpop.eup %1749 }
 0xc3b   :  { %v1752_v37 = vpop.eup %1751  ;;  %v916_v38 = vadd.f32 1.0, %v1750_v35 }
 0xc3c   :  { %921 = vrot.lane.b32.xlu1 %v912_v30, %s1857_s14  ;;  %v945_v39 = vadd.f32 1.0, %v1752_v37 }
 0xc3d   :  { %1753 = vrcp.f32 %v916_v38 }
 0xc3e   :  { %950 = vrot.lane.b32.xlu0 %v941_v31, %s1857_s14  ;;  %1755 = vrcp.f32 %v945_v39 }
 0xc4a   :  { %v2263_v40 = vpop.eup %1753 }
 0xc4b   :  { %v2266_v43 = vpop.eup %1755 }
 0xcaa   :  { %v927_v41 = vpop.permute.xlu1 %926 }
 0xcab   :  { %v929_v42 = vmul.f32 %v2263_v40, %v927_v41 }
 0xcac   :  { %v956_v44 = vpop.permute.xlu0 %955 }
 0xcad   :  { %931 = vrot.lane.b32.xlu1 %v929_v42, %s1857_s14  ;;  %v958_v45 = vmul.f32 %v2266_v43, %v956_v44 }
 0xcae   :  { %v922_v46 = vpop.permute.xlu1 %921 }
 0xcaf   :  { %960 = vrot.lane.b32.xlu0 %v958_v45, %s1857_s14  ;;  %v924_v47 = vmul.f32 %v2263_v40, %v922_v46 }
 0xcb0   :  { %v951_v48 = vpop.permute.xlu0 %950 }
 0xcb1   :  { %v953_v51 = vmul.f32 %v2266_v43, %v951_v48 }
 0xd1f   :  { %v932_v49 = vpop.permute.xlu1 %931 }
 0xd20   :  { %v2272_v50 = vadd.f32 %v932_v49, %v924_v47 }
 0xd21   :  { %v961_v52 = vpop.permute.xlu0 %960 }
 0xd22   :  { %1757 = vtanh.f32 %v2272_v50  ;;  %v2276_v53 = vadd.f32 %v961_v52, %v953_v51 }
 0xd24   :  { %1759 = vtanh.f32 %v2276_v53 }
 0xd2f   :  { %v1758_v62 = vpop.eup %1757 }
 0xd30   :  { %937 = vrot.lane.b32.xlu1 %v1758_v62, %s1856_s13 }
 0xd31   :  { %v1760_v8 = vpop.eup %1759 }
 0xd32   :  { %966 = vrot.lane.b32.xlu0 %v1760_v8, %s1856_s13 }
 0xda2   :  { %v938_v21 = vpop.permute.xlu1 %937 }
 0xda3   :  { %v2408_v22 = vmul.f32 %v2263_v40, %v938_v21 }
 0xda4   :  { %v967_v23 = vpop.permute.xlu0 %966 }
 0xda5   :  { %971 = vrot.lane.b32.xlu1 %v2408_v22, %s1858_s15  ;;  %v2414_v24 = vmul.f32 %v2266_v43, %v967_v23 }
 0xda7   :  { %976 = vrot.lane.b32.xlu0 %v2414_v24, %s1859_s18 }
 0xda9   :  { %1002 = vrot.lane.b32.xlu1 %v1652_v25, %s1853_s21 }
 0xdab   :  { %981 = vrot.lane.b32.xlu0 %v2272_v50, %s1860_s19 }
 0xdad   :  { %986 = vrot.lane.b32.xlu1 %v2276_v53, %s1860_s19 }
 0xe17   :  { %v972_v26 = vpop.permute.xlu1 %971 }
 0xe18   :  { %974 = vst.msk [vmem:[#allocation2] sm:$0x3] %vm194_vm6, %v972_v26 }
 0xe19   :  { %v977_v28 = vpop.permute.xlu0 %976 }
 0xe1a   :  { %979 = vst.msk [vmem:[#allocation2] sm:$0x3] %vm200_vm7, %v977_v28 }
 0xe1b   :  { %v1003_v29 = vpop.permute.xlu1 %1002  ;;  %999 = vst.msk [vmem:[#allocation2] sm:$0x3] %vm24_vm2, %v1651_v27 }
 0xe1c   :  { %1005 = vst.msk [vmem:[#allocation2] sm:$0x3] %vm32_vm3, %v1003_v29 }
 0xe1d   :  { %v982_v30 = vpop.permute.xlu0 %981 }
 0xe1e   :  { %984 = vst.msk [vmem:[#allocation3] sm:$0x3] %vm20_vm5, %v982_v30 }
 0xe1f   :  { %v987_v31 = vpop.permute.xlu1 %986 }
 0xe20   :  { %989 = vst.msk [vmem:[#allocation4] sm:$0x3] %vm20_vm5, %v987_v31 }
 0xe23   :  { %v1006_v32 = vld [vmem:[#allocation2] sm:$0x3] }
 0xe24   :  { %1653 = vmatmul.mubr.msk.f32.vlgmr.msra.gmra.mxu1 %vm57_vm4, %v1006_v32 }
 0xe25   :  { %1425 = vmatpush1.msra.mxu1 %v2287_v56  ;;  %1478 = vmatprep.mubr.f32.mxu1 %v1854_v6  ;;  %v1103_v38 = vld [vmem:[#allocation3] sm:$0x3] }
 0xe26   :  { %1426 = vmatprep.subr.mxu1 %v2292_v60 }
 0xe27   :  { %1427 = vmatpush1.msra.mxu1 %v2298_v61  ;;  %v1132_v39 = vld [vmem:[#allocation4] sm:$0x3] }
 0xe28   :  { %1428 = vmatprep.subr.mxu1 %v2305_v63 }
 0xe29   :  { %1429 = vmatpush1.msra.mxu1 %v2313_v0 }
 0xe2a   :  { %1430 = vmatprep.subr.mxu1 %v2319_v1 }
 0xe2b   :  { %1431 = vmatpush1.msra.mxu1 %v2326_v11 }
 0xe2c   :  { %1432 = vmatprep.subr.mxu1 %v2334_v2 }
 0xe2d   :  { %1433 = vmatpush1.msra.mxu1 %v2340_v3 }
 0xe2e   :  { %1434 = vmatprep.subr.mxu1 %v2354_v4  ;;  %v1659_v4 = vld [vmem:[%s2634_s0 + $0x2] sm:$0x3] }
 0xe2f   :  { %1435 = vmatpush1.msra.mxu1 %v2359_v5 }
 0xe30   :  { %1436 = vmatprep.subr.mxu1 %v2367_v7  ;;  %v1658_v7 = vld [vmem:[%s2634_s0 + $0xc] sm:$0x3] }
 0xe31   :  { %1437 = vmatpush1.msra.mxu1 %v2374_v9 }
 0xe32   :  { %1438 = vmatprep.subr.mxu1 %v2381_v10 }
 0xe33   :  { %1439 = vmatpush1.msra.mxu1 %v1013_v12 }
 0xe34   :  { %1440 = vmatprep.subr.mxu1 %v1012_v13 }
 0xe35   :  { %1441 = vmatpush1.msra.mxu1 %v1011_v14 }
 0xe36   :  { %1442 = vmatprep.subr.mxu1 %v1010_v16 }
 0xe37   :  { %1443 = vmatpush1.msra.mxu1 %v1009_v18 }
 0xe38   :  { %1444 = vmatprep.subr.mxu1 %v1008_v19 }
 0xe39   :  { %1445 = vmatpush1.msra.mxu1 %v1007_v20 }
 0xee4   :  { %v1098_v6 = vpop.f32.mrf.mxu1 }
 0xee5   :  { %1761 = vtanh.f32 %v1098_v6  ;;  %v1654_v40 = vmul.f32 -1.442695, %v1098_v6 }
 0xee6   :  { %v1100_v33 = vpop.f32.mrf.mxu1 }
 0xee7   :  { %1763 = vtanh.f32 %v1100_v33  ;;  %v1655_v41 = vmul.f32 -1.442695, %v1100_v33 }
 0xee8   :  { %1765 = vpow2.f32 %v1654_v40 }
 0xee9   :  { %1767 = vpow2.f32 %v1655_v41 }
 0xef2   :  { %v1762_v35 = vpop.eup %1761 }
 0xef3   :  { %1117 = vrot.lane.b32.xlu0 %v1762_v35, %s1856_s13 }
 0xef4   :  { %v1764_v37 = vpop.eup %1763 }
 0xef5   :  { %1146 = vrot.lane.b32.xlu1 %v1764_v37, %s1856_s13  ;;  %v1766_v42 = vpop.eup %1765 }
 0xef6   :  { %v1768_v43 = vpop.eup %1767  ;;  %v1107_v44 = vadd.f32 1.0, %v1766_v42 }
 0xef7   :  { %1112 = vrot.lane.b32.xlu0 %v1103_v38, %s1857_s14  ;;  %v1136_v45 = vadd.f32 1.0, %v1768_v43 }
 0xef8   :  { %1769 = vrcp.f32 %v1107_v44 }
 0xef9   :  { %1141 = vrot.lane.b32.xlu1 %v1132_v39, %s1857_s14  ;;  %1771 = vrcp.f32 %v1136_v45 }
 0xf05   :  { %v1770_v46 = vpop.eup %1769 }
 0xf06   :  { %v1772_v49 = vpop.eup %1771 }
 0xf65   :  { %v1118_v47 = vpop.permute.xlu0 %1117 }
 0xf66   :  { %v1120_v48 = vmul.f32 %v1770_v46, %v1118_v47 }
 0xf67   :  { %v1147_v50 = vpop.permute.xlu1 %1146 }
 0xf68   :  { %1122 = vrot.lane.b32.xlu0 %v1120_v48, %s1857_s14  ;;  %v1149_v51 = vmul.f32 %v1772_v49, %v1147_v50 }
 0xf69   :  { %v1113_v52 = vpop.permute.xlu0 %1112 }
 0xf6a   :  { %1151 = vrot.lane.b32.xlu1 %v1149_v51, %s1857_s14  ;;  %v1115_v53 = vmul.f32 %v1770_v46, %v1113_v52  ;;  %v1382_v52 = vld [vmem:[%s2634_s0] sm:$0x3] }
 0xf6b   :  { %v1142_v54 = vpop.permute.xlu1 %1141 }
 0xf6c   :  { %v1144_v61 = vmul.f32 %v1772_v49, %v1142_v54  ;;  %v1665_v54 = vld [vmem:[%s2634_s0 + $0xe] sm:$0x3]  ;;  %s1809_s0 = scalar_lea.vmem %s1595_s27, 32 }
 0xf6d   :  { %p1810_p0 = scmp.ne.s32.totalorder %s1595_s27, %s1809_s0  ;;  %p1815_p2 = scmp.lt.s32.totalorder %s1809_s0, %s1809_s0 }
 0xf6f   :  { %p1816_p3 = por %p1815_p2, %p1814_p1 }
 0xf71   :  { %p1817_p4 = pnand %p1816_p3, %p1810_p0 }
 0xfda   :  { %v1123_v56 = vpop.permute.xlu0 %1122 }
 0xfdb   :  { %v1125_v60 = vadd.f32 %v1123_v56, %v1115_v53 }
 0xfdc   :  { %v1152_v62 = vpop.permute.xlu1 %1151 }
 0xfdd   :  { %1773 = vtanh.f32 %v1125_v60  ;;  %v1154_v63 = vadd.f32 %v1152_v62, %v1144_v61 }
 0xfdf   :  { %1775 = vtanh.f32 %v1154_v63 }
 0xfea   :  { %v1774_v0 = vpop.eup %1773 }
 0xfeb   :  { %1128 = vrot.lane.b32.xlu0 %v1774_v0, %s1856_s13 }
 0xfec   :  { %v1776_v1 = vpop.eup %1775 }
 0xfed   :  { %1157 = vrot.lane.b32.xlu1 %v1776_v1, %s1856_s13 }
0x105d   :  { %v1129_v8 = vpop.permute.xlu0 %1128 }
0x105e   :  { %v2459_v11 = vmul.f32 %v1770_v46, %v1129_v8 }
0x105f   :  { %v1158_v2 = vpop.permute.xlu1 %1157 }
0x1060   :  { %1162 = vrot.lane.b32.xlu0 %v2459_v11, %s1858_s15  ;;  %v2463_v3 = vmul.f32 %v1772_v49, %v1158_v2 }
0x1062   :  { %1167 = vrot.lane.b32.xlu1 %v2463_v3, %s1859_s18 }
0x1064   :  { %1193 = vrot.lane.b32.xlu0 %v1659_v4, %s1853_s21 }
0x1066   :  { %1172 = vrot.lane.b32.xlu1 %v1125_v60, %s1860_s19 }
0x1068   :  { %1177 = vrot.lane.b32.xlu0 %v1154_v63, %s1860_s19 }
0x10d2   :  { %v1163_v5 = vpop.permute.xlu0 %1162 }
0x10d3   :  { %1165 = vst.msk [vmem:[#allocation2] sm:$0x3] %vm194_vm6, %v1163_v5 }
0x10d4   :  { %v1168_v9 = vpop.permute.xlu1 %1167 }
0x10d5   :  { %1170 = vst.msk [vmem:[#allocation2] sm:$0x3] %vm200_vm7, %v1168_v9 }
0x10d6   :  { %v1194_v10 = vpop.permute.xlu0 %1193  ;;  %1190 = vst.msk [vmem:[#allocation2] sm:$0x3] %vm24_vm2, %v1658_v7 }
0x10d7   :  { %1196 = vst.msk [vmem:[#allocation2] sm:$0x3] %vm32_vm3, %v1194_v10 }
0x10d8   :  { %v1173_v12 = vpop.permute.xlu1 %1172 }
0x10d9   :  { %1175 = vst.msk [vmem:[#allocation3] sm:$0x3] %vm20_vm5, %v1173_v12 }
0x10da   :  { %v1178_v13 = vpop.permute.xlu0 %1177 }
0x10db   :  { %1180 = vst.msk [vmem:[#allocation4] sm:$0x3] %vm20_vm5, %v1178_v13 }
0x10de   :  { %v1197_v14 = vld [vmem:[#allocation2] sm:$0x3] }
0x10df   :  { %1660 = vmatmul.mubr.msk.f32.vlgmr.msra.gmra.mxu0 %vm57_vm4, %v1197_v14 }
0x10e0   :  { %v1294_v21 = vld [vmem:[#allocation3] sm:$0x3] }
0x10e2   :  { %v1323_v23 = vld [vmem:[#allocation4] sm:$0x3] }
0x119f   :  { %v1289_v16 = vpop.f32.mrf.mxu0 }
0x11a0   :  { %1777 = vtanh.f32 %v1289_v16  ;;  %v1661_v25 = vmul.f32 -1.442695, %v1289_v16 }
0x11a1   :  { %v1291_v18 = vpop.f32.mrf.mxu0 }
0x11a2   :  { %1779 = vtanh.f32 %v1291_v18  ;;  %v1662_v26 = vmul.f32 -1.442695, %v1291_v18 }
0x11a3   :  { %1781 = vpow2.f32 %v1661_v25 }
0x11a4   :  { %1783 = vpow2.f32 %v1662_v26 }
0x11ad   :  { %v1778_v19 = vpop.eup %1777 }
0x11ae   :  { %1308 = vrot.lane.b32.xlu1 %v1778_v19, %s1856_s13 }
0x11af   :  { %v1780_v20 = vpop.eup %1779 }
0x11b0   :  { %1337 = vrot.lane.b32.xlu0 %v1780_v20, %s1856_s13  ;;  %v1782_v27 = vpop.eup %1781 }
0x11b1   :  { %v1784_v28 = vpop.eup %1783  ;;  %v1298_v29 = vadd.f32 1.0, %v1782_v27 }
0x11b2   :  { %1303 = vrot.lane.b32.xlu1 %v1294_v21, %s1857_s14  ;;  %v1327_v30 = vadd.f32 1.0, %v1784_v28 }
0x11b3   :  { %1785 = vrcp.f32 %v1298_v29 }
0x11b4   :  { %1332 = vrot.lane.b32.xlu0 %v1323_v23, %s1857_s14  ;;  %1787 = vrcp.f32 %v1327_v30 }
0x11c0   :  { %v1786_v31 = vpop.eup %1785 }
0x11c1   :  { %v1788_v33 = vpop.eup %1787 }
0x1220   :  { %v1309_v32 = vpop.permute.xlu1 %1308 }
0x1221   :  { %v1311_v6 = vmul.f32 %v1786_v31, %v1309_v32 }
0x1222   :  { %v1338_v35 = vpop.permute.xlu0 %1337 }
0x1223   :  { %1313 = vrot.lane.b32.xlu1 %v1311_v6, %s1857_s14  ;;  %v1340_v37 = vmul.f32 %v1788_v33, %v1338_v35 }
0x1224   :  { %v1304_v38 = vpop.permute.xlu1 %1303 }
0x1225   :  { %1342 = vrot.lane.b32.xlu0 %v1340_v37, %s1857_s14  ;;  %v1306_v39 = vmul.f32 %v1786_v31, %v1304_v38 }
0x1226   :  { %v1333_v40 = vpop.permute.xlu0 %1332 }
0x1227   :  { %v1335_v43 = vmul.f32 %v1788_v33, %v1333_v40 }
0x1295   :  { %v1314_v41 = vpop.permute.xlu1 %1313 }
0x1296   :  { %v1316_v42 = vadd.f32 %v1314_v41, %v1306_v39 }
0x1297   :  { %v1343_v44 = vpop.permute.xlu0 %1342 }
0x1298   :  { %1789 = vtanh.f32 %v1316_v42  ;;  %v1345_v45 = vadd.f32 %v1343_v44, %v1335_v43 }
0x129a   :  { %1791 = vtanh.f32 %v1345_v45 }
0x12a5   :  { %v1790_v46 = vpop.eup %1789 }
0x12a6   :  { %1319 = vrot.lane.b32.xlu1 %v1790_v46, %s1856_s13 }
0x12a7   :  { %v1792_v47 = vpop.eup %1791 }
0x12a8   :  { %1348 = vrot.lane.b32.xlu0 %v1792_v47, %s1856_s13 }
0x1318   :  { %v1320_v48 = vpop.permute.xlu1 %1319 }
0x1319   :  { %v2491_v49 = vmul.f32 %v1786_v31, %v1320_v48 }
0x131a   :  { %v1349_v50 = vpop.permute.xlu0 %1348 }
0x131b   :  { %1353 = vrot.lane.b32.xlu1 %v2491_v49, %s1858_s15  ;;  %v2495_v51 = vmul.f32 %v1788_v33, %v1349_v50 }
0x131d   :  { %1358 = vrot.lane.b32.xlu0 %v2495_v51, %s1859_s18 }
0x131f   :  { %1384 = vrot.lane.b32.xlu1 %v1382_v52, %s1853_s21 }
0x1321   :  { %1363 = vrot.lane.b32.xlu0 %v1316_v42, %s1860_s19 }
0x1323   :  { %1368 = vrot.lane.b32.xlu1 %v1345_v45, %s1860_s19 }
0x138d   :  { %v1354_v53 = vpop.permute.xlu1 %1353 }
0x138e   :  { %1356 = vst.msk [vmem:[#allocation2] sm:$0x3] %vm194_vm6, %v1354_v53 }
0x138f   :  { %v1359_v56 = vpop.permute.xlu0 %1358 }
0x1390   :  { %1361 = vst.msk [vmem:[#allocation2] sm:$0x3] %vm200_vm7, %v1359_v56 }
0x1391   :  { %v1385_v60 = vpop.permute.xlu1 %1384  ;;  %1381 = vst.msk [vmem:[#allocation2] sm:$0x3] %vm24_vm2, %v1665_v54 }
0x1392   :  { %1387 = vst.msk [vmem:[#allocation2] sm:$0x3] %vm32_vm3, %v1385_v60 }
0x1393   :  { %v1364_v61 = vpop.permute.xlu0 %1363 }
0x1394   :  { %1366 = vst.msk [vmem:[#allocation3] sm:$0x3] %vm20_vm5, %v1364_v61 }
0x1395   :  { %v1369_v62 = vpop.permute.xlu1 %1368 }
0x1396   :  { %1371 = vst.msk [vmem:[#allocation4] sm:$0x3] %vm20_vm5, %v1369_v62 }
0x1399   :  { %v1388_v63 = vld [vmem:[#allocation2] sm:$0x3] }
0x139a   :  { %1666 = vmatmul.mubr.msk.f32.vlgmr.msra.gmra.mxu1 %vm57_vm4, %v1388_v63 }
0x139b   :  { %v1485_v4 = vld [vmem:[#allocation3] sm:$0x3] }
0x139d   :  { %v1514_v5 = vld [vmem:[#allocation4] sm:$0x3] }
0x145a   :  { %v1480_v0 = vpop.f32.mrf.mxu1 }
0x145b   :  { %1793 = vtanh.f32 %v1480_v0  ;;  %v1667_v7 = vmul.f32 -1.442695, %v1480_v0 }
0x145c   :  { %v1482_v1 = vpop.f32.mrf.mxu1 }
0x145d   :  { %1795 = vtanh.f32 %v1482_v1  ;;  %v1668_v9 = vmul.f32 -1.442695, %v1482_v1 }
0x145e   :  { %1797 = vpow2.f32 %v1667_v7 }
0x145f   :  { %1799 = vpow2.f32 %v1668_v9 }
0x1468   :  { %v1794_v8 = vpop.eup %1793 }
0x1469   :  { %1499 = vrot.lane.b32.xlu0 %v1794_v8, %s1856_s13 }
0x146a   :  { %v1796_v2 = vpop.eup %1795 }
0x146b   :  { %1528 = vrot.lane.b32.xlu1 %v1796_v2, %s1856_s13  ;;  %v1798_v10 = vpop.eup %1797 }
0x146c   :  { %v1800_v12 = vpop.eup %1799  ;;  %v1489_v13 = vadd.f32 1.0, %v1798_v10 }
0x146d   :  { %1494 = vrot.lane.b32.xlu0 %v1485_v4, %s1857_s14  ;;  %v1518_v14 = vadd.f32 1.0, %v1800_v12 }
0x146e   :  { %1801 = vrcp.f32 %v1489_v13 }
0x146f   :  { %1523 = vrot.lane.b32.xlu1 %v1514_v5, %s1857_s14  ;;  %1803 = vrcp.f32 %v1518_v14 }
0x147b   :  { %v1802_v16 = vpop.eup %1801 }
0x147c   :  { %v1804_v20 = vpop.eup %1803 }
0x14db   :  { %v1500_v18 = vpop.permute.xlu0 %1499 }
0x14dc   :  { %v1502_v19 = vmul.f32 %v1802_v16, %v1500_v18 }
0x14dd   :  { %v1529_v21 = vpop.permute.xlu1 %1528 }
0x14de   :  { %1504 = vrot.lane.b32.xlu0 %v1502_v19, %s1857_s14  ;;  %v1531_v23 = vmul.f32 %v1804_v20, %v1529_v21 }
0x14df   :  { %v1495_v25 = vpop.permute.xlu0 %1494 }
0x14e0   :  { %1533 = vrot.lane.b32.xlu1 %v1531_v23, %s1857_s14  ;;  %v1497_v26 = vmul.f32 %v1802_v16, %v1495_v25 }
0x14e1   :  { %v1524_v27 = vpop.permute.xlu1 %1523 }
0x14e2   :  { %v1526_v30 = vmul.f32 %v1804_v20, %v1524_v27 }
0x1550   :  { %v1505_v28 = vpop.permute.xlu0 %1504 }
0x1551   :  { %v1507_v29 = vadd.f32 %v1505_v28, %v1497_v26 }
0x1552   :  { %v1534_v31 = vpop.permute.xlu1 %1533 }
0x1553   :  { %1805 = vtanh.f32 %v1507_v29  ;;  %v1536_v32 = vadd.f32 %v1534_v31, %v1526_v30 }
0x1555   :  { %1807 = vtanh.f32 %v1536_v32 }
0x1560   :  { %v1806_v6 = vpop.eup %1805 }
0x1561   :  { %1510 = vrot.lane.b32.xlu0 %v1806_v6, %s1856_s13 }
0x1562   :  { %v1808_v33 = vpop.eup %1807 }
0x1563   :  { %1539 = vrot.lane.b32.xlu1 %v1808_v33, %s1856_s13 }
0x15d3   :  { %v1511_v35 = vpop.permute.xlu0 %1510 }
0x15d4   :  { %v1513_v37 = vmul.f32 %v1802_v16, %v1511_v35 }
0x15d5   :  { %v1540_v38 = vpop.permute.xlu1 %1539 }
0x15d6   :  { %1544 = vrot.lane.b32.xlu0 %v1513_v37, %s1858_s15  ;;  %v1542_v39 = vmul.f32 %v1804_v20, %v1540_v38 }
0x15d8   :  { %1549 = vrot.lane.b32.xlu1 %v1542_v39, %s1859_s18 }
0x15da   :  { %1559 = vrot.lane.b32.xlu0 %v1536_v32, %s1860_s19 }
0x15dc   :  { %1554 = vrot.lane.b32.xlu1 %v1507_v29, %s1860_s19  ;;  %s1861_s19 = smov 112  }
0x15de   :  { %212 = vrot.lane.b32.xlu0 %v2093_v57, %s1857_s14 }
0x15e0   :  { %216 = vrot.lane.b32.xlu1 %v2097_v59, %s1856_s13 }
0x15e2   :  { %407 = vrot.lane.b32.xlu0 %v2147_v55, %s1857_s14 }
0x15e4   :  { %412 = vrot.lane.b32.xlu1 %v2151_v58, %s1856_s13 }
0x15e6   :  { %602 = vrot.lane.b32.xlu0 %v2201_v34, %s1857_s14 }
0x15e8   :  { %607 = vrot.lane.b32.xlu1 %v2205_v36, %s1856_s13 }
0x15ea   :  { %797 = vrot.lane.b32.xlu0 %v2234_v15, %s1857_s14 }
0x15ec   :  { %802 = vrot.lane.b32.xlu1 %v2238_v17, %s1856_s13 }
0x15ee   :  { %990 = vrot.lane.b32.xlu0 %v2408_v22, %s1857_s14 }
0x15f2   :  { %1181 = vrot.lane.b32.xlu0 %v2459_v11, %s1857_s14 }
0x15f6   :  { %1372 = vrot.lane.b32.xlu0 %v2491_v49, %s1857_s14 }
0x1648   :  { %v1545_v57 = vpop.permute.xlu0 %1544 }
0x1649   :  { %1547 = vst.msk [vmem:[#allocation2] sm:$0x3] %vm194_vm6, %v1545_v57 }
0x164a   :  { %v1550_v59 = vpop.permute.xlu1 %1549 }
0x164b   :  { %1552 = vst.msk [vmem:[#allocation2] sm:$0x3] %vm200_vm7, %v1550_v59 }
0x164c   :  { %v1560_v55 = vpop.permute.xlu0 %1559 }
0x164d   :  { %1562 = vst.msk [vmem:[#allocation4] sm:$0x3] %vm20_vm5, %v1560_v55 }
0x164e   :  { %v1555_v58 = vpop.permute.xlu1 %1554 }
0x164f   :  { %1557 = vst.msk [vmem:[#allocation3] sm:$0x3] %vm20_vm5, %v1555_v58 }
0x1650   :  { %v213_v34 = vpop.permute.xlu0 %212 }
0x1651   :  { %215 = vst.msk [vmem:[%s2636_s2] sm:$0x3] %vm20_vm5, %v213_v34 }
0x1652   :  { %v217_v36 = vpop.permute.xlu1 %216  ;;  %v1571_v15 = vld [vmem:[#allocation2] sm:$0x3] }
0x1653   :  { %1622 = vst.msk [vmem:[%s2636_s2 + $0xe] sm:$0x3] %vm220_vm8, %v217_v36  ;;  %1573 = vrot.lane.b32.xlu0 %v1571_v15, %s1861_s19 }
0x1654   :  { %v408_v17 = vpop.permute.xlu0 %407  ;;  %v1580_v22 = vld [vmem:[#allocation4] sm:$0x3] }
0x1655   :  { %1628 = vst.msk [vmem:[%s2636_s2 + $0x2] sm:$0x3] %vm20_vm5, %v408_v17  ;;  %1582 = vrot.lane.b32.xlu1 %v1580_v22, %s1857_s14 }
0x1656   :  { %v413_v11 = vpop.permute.xlu1 %412  ;;  %v1578_v40 = vld [vmem:[#allocation3] sm:$0x3] }
0x1657   :  { %1629 = vst.msk [vmem:[%s2636_s2 + $0xc] sm:$0x3] %vm220_vm8, %v413_v11  ;;  %1563 = vrot.lane.b32.xlu0 %v1513_v37, %s1857_s14 }
0x1658   :  { %v603_v41 = vpop.permute.xlu0 %602  ;;  %1579 = vst.msk [vmem:[#allocation7] sm:$0x3] %vm20_vm5, %v1578_v40 }
0x1659   :  { %1635 = vst.msk [vmem:[%s2636_s2 + $0x4] sm:$0x3] %vm20_vm5, %v603_v41  ;;  %994 = vrot.lane.b32.xlu1 %v2414_v24, %s1856_s13 }
0x165a   :  { %v608_v42 = vpop.permute.xlu1 %607 }
0x165b   :  { %1636 = vst.msk [vmem:[%s2636_s2 + $0xa] sm:$0x3] %vm220_vm8, %v608_v42 }
0x165c   :  { %v798_v43 = vpop.permute.xlu0 %797 }
0x165d   :  { %1642 = vst.msk [vmem:[%s2636_s2 + $0x6] sm:$0x3] %vm20_vm5, %v798_v43  ;;  %1185 = vrot.lane.b32.xlu1 %v2463_v3, %s1856_s13 }
0x165e   :  { %v803_v44 = vpop.permute.xlu1 %802 }
0x165f   :  { %1643 = vst.msk [vmem:[%s2636_s2 + $0x8] sm:$0x3] %vm220_vm8, %v803_v44 }
0x1660   :  { %v991_v24 = vpop.permute.xlu0 %990 }
0x1661   :  { %1649 = vst.msk [vmem:[%s2636_s2 + $0x8] sm:$0x3] %vm20_vm5, %v991_v24  ;;  %1376 = vrot.lane.b32.xlu1 %v2495_v51, %s1856_s13 }
0x1664   :  { %v1182_v45 = vpop.permute.xlu0 %1181 }
0x1665   :  { %1656 = vst.msk [vmem:[%s2636_s2 + $0xa] sm:$0x3] %vm20_vm5, %v1182_v45  ;;  %1567 = vrot.lane.b32.xlu1 %v1542_v39, %s1856_s13 }
0x1668   :  { %v1373_v3 = vpop.permute.xlu0 %1372 }
0x1669   :  { %1663 = vst.msk [vmem:[%s2636_s2 + $0xc] sm:$0x3] %vm20_vm5, %v1373_v3 }
0x16c5   :  { %v1574_v46 = vpop.permute.xlu0 %1573 }
0x16c6   :  { %1577 = vst.msk [vmem:[#allocation5] sm:$0x3] %vm1576_vm9, %v1574_v46 }
0x16c7   :  { %v1583_v47 = vpop.permute.xlu1 %1582 }
0x16c8   :  { %1820 = shalt.err (!%p1817_p4)
}
0x16c9   :  { %1597 = dma.vmem_to_hbm [thread:$0]  %s1595_s27, 32, %s2637_s3, [#allocation6]   ;;  %1585 = vst.msk [vmem:[#allocation7] sm:$0x3] %vm220_vm8, %v1583_v47 }
0x16ca   :  { %s1829_s15 = scalar_lea.vmem %s1605_s29, 32  ;;  %p1834_p6 = scmp.lt.s32.totalorder %s1605_s29, %s1605_s29 }
0x16cb   :  { %p1830_p5 = scmp.ne.s32.totalorder %s1605_s29, %s1829_s15  ;;  %p1835_p7 = scmp.lt.s32.totalorder %s1829_s15, %s1829_s15 }
0x16cd   :  { %p1836_p8 = por %p1835_p7, %p1834_p6 }
0x16cf   :  { %p1837_p9 = pnand %p1836_p8, %p1830_p5 }
0x16d1   :  { %1840 = shalt.err (!%p1837_p9)
}
0x16d2   :  { %1607 = dma.vmem_to_hbm [thread:$0]  %s1605_s29, 32, %s2638_s4, [#allocation8]   ;;  %v1564_v48 = vpop.permute.xlu0 %1563  ;;  %v995_v49 = vpop.permute.xlu1 %994 }
0x16d3   :  { %1669 = vst.msk [vmem:[%s2636_s2 + $0xe] sm:$0x3] %vm20_vm5, %v1564_v48 }
0x16d4   :  { %1650 = vst.msk [vmem:[%s2636_s2 + $0x6] sm:$0x3] %vm220_vm8, %v995_v49 }
0x16d6   :  { %v1186_v50 = vpop.permute.xlu1 %1185 }
0x16d7   :  { %1657 = vst.msk [vmem:[%s2636_s2 + $0x4] sm:$0x3] %vm220_vm8, %v1186_v50 }
0x16da   :  { %v1377_v51 = vpop.permute.xlu1 %1376 }
0x16db   :  { %1664 = vst.msk [vmem:[%s2636_s2 + $0x2] sm:$0x3] %vm220_vm8, %v1377_v51 }
0x16de   :  { %v1568_v52 = vpop.permute.xlu1 %1567 }
0x16df   :  { %1570 = vst.msk [vmem:[%s2636_s2] sm:$0x3] %vm220_vm8, %v1568_v52 }
0x16e0   :  { %1849 = dma.done.wait [#allocation6], 32  }
0x16e1   :  { %1850 = vsyncadd [#allocation6], 4294967264 }
0x16e2   :  { %1851 = dma.done.wait [#allocation8], 32  }
0x16e3   :  { %1852 = vsyncadd [#allocation8], 4294967264 }
0x16e4   :  { %1616 = vsyncpa [#allocation6], 1 }
0x16e5   :  { %1617 = vsyncpa [#allocation8], 1 }

</bundles_post_ra>
